<compile_context>
chip_gen: v7x
topology: tpu7x:2x2x1
jax: 0.10.0
libtpu: 0.0.40
codegen_flags: <defaults>
</compile_context>

<pallas_src>
import math

import jax
import jax.numpy as jnp
from jax.experimental import pallas as pl
from jax.experimental.pallas import tpu as pltpu

# ------------------------------ model config ------------------------------- #

BATCH = 2
CIN = 3            # RGB, like CLIP
IMG = 16           # input resolution
PATCH = 8          # patch size  -> grid = 2, Np = 4
WIDTH = 32         # transformer width
HEADS = 4          # head_dim = 8
LAYERS = 2
OUT_DIM = 16       # CLIP output_dim (self.out_dim)

GRID = IMG // PATCH
NP = GRID * GRID
NTOK = NP + 1                      # class token + patches
T_PAD = ((NTOK + 7) // 8) * 8      # token axis padded to a sublane multiple of 8
HEAD_DIM = WIDTH // HEADS
K_PATCH = CIN * PATCH * PATCH

LN_EPS = 1e-5
ATTN_SCALE = 1.0 / math.sqrt(HEAD_DIM)
NEG_BIG = -1e30


# ------------------------------ fused kernel ------------------------------- #

def _clip_vit_kernel(
    # constant (layer-independent) inputs
    patches_ref,    # [B, T_PAD, K_PATCH] f32   (row 0 and padding rows are zero)
    conv_w_ref,     # [K_PATCH, W]        bf16
    tok_bias_ref,   # [T_PAD, W]          f32   (row 0 = cls+pos0, rows 1..NP = pos)
    ln_pre_ref,     # [2, W]              f32   (gamma; beta)
    ln_post_ref,    # [2, W]              f32
    proj_ref,       # [W, OUT_DIM]        bf16
    # per-layer inputs (leading LAYERS dim squeezed away by BlockSpec)
    ln_lyr_ref,     # [4, W]   f32   (ln1_g, ln1_b, ln2_g, ln2_b)
    wqkv_ref,       # [W, 3W]  bf16
    bqkv_ref,       # [1, 3W]  f32
    wout_ref,       # [W, W]   bf16
    bout_ref,       # [1, W]   f32
    wfc_ref,        # [W, 4W]  bf16
    bfc_ref,        # [1, 4W]  f32
    wproj_ref,      # [4W, W]  bf16
    bproj_ref,      # [1, W]   f32
    # output
    out_ref,        # [B, OUT_DIM] f32
    # scratch
    h_ref,          # VMEM [B, T_PAD, W] f32  -- resident activations across layers
):
    def layer_norm(x, g, b):
        mu = jnp.mean(x, axis=-1, keepdims=True)
        xc = x - mu
        var = jnp.mean(xc * xc, axis=-1, keepdims=True)
        return xc * jax.lax.rsqrt(var + LN_EPS) * g + b

    def mm(x, w):
        """[..., K] @ [K, N] with bf16 MXU operands and f32 accumulation."""
        lead = x.shape[:-1]
        y = jnp.dot(
            x.reshape(-1, x.shape[-1]).astype(jnp.bfloat16), w,
            preferred_element_type=jnp.float32)
        return y.reshape(lead + (w.shape[-1],))

    # ---- grid step 0: patch-embed matmul + class/pos embedding + ln_pre ----
    @pl.when(pl.program_id(0) == 0)
    def _init():
        emb = mm(patches_ref[...], conv_w_ref[...])               # [B, T_PAD, W]
        h_ref[...] = layer_norm(emb + tok_bias_ref[...][None],
                                ln_pre_ref[0], ln_pre_ref[1])

    h = h_ref[...]                                                # [B, T_PAD, W] f32

    # ------------------------- attention branch -------------------------- #
    hn = layer_norm(h, ln_lyr_ref[0], ln_lyr_ref[1])
    qkv = mm(hn, wqkv_ref[...]) + bqkv_ref[...]                   # [B, T_PAD, 3W]
    q = qkv[..., 0:WIDTH] * jnp.float32(ATTN_SCALE)               # scale folded into q
    k = qkv[..., WIDTH:2 * WIDTH]
    v = qkv[..., 2 * WIDTH:3 * WIDTH]

    # mask padded key columns (tokens NTOK..T_PAD-1)
    kidx = jax.lax.broadcasted_iota(jnp.int32, (1, 1, T_PAD), 2)
    key_bias = jnp.where(kidx < NTOK, jnp.float32(0.0), jnp.float32(NEG_BIG))

    attn = jnp.zeros((BATCH, T_PAD, WIDTH), jnp.float32)
    for hh in range(HEADS):                                       # static unroll
        lo = hh * HEAD_DIM
        qh = q[..., lo:lo + HEAD_DIM].astype(jnp.bfloat16)
        kh = k[..., lo:lo + HEAD_DIM].astype(jnp.bfloat16)
        vh = v[..., lo:lo + HEAD_DIM].astype(jnp.bfloat16)
        # scores: contract head dim directly (no k.T transpose)   -> [B, T, T]
        s = jax.lax.dot_general(qh, kh, (((2,), (2,)), ((0,), (0,))),
                                preferred_element_type=jnp.float32) + key_bias
        s = s - jnp.max(s, axis=-1, keepdims=True)
        p = jnp.exp(s)
        p = p * pl.reciprocal(jnp.sum(p, axis=-1, keepdims=True), approx=True)
        ctx = jax.lax.dot_general(p.astype(jnp.bfloat16), vh,
                                  (((2,), (1,)), ((0,), (0,))),
                                  preferred_element_type=jnp.float32)  # [B, T, dh]
        # fold the head merge into the output projection: ctx_h @ Wout[h*dh:(h+1)*dh]
        attn = attn + mm(ctx, wout_ref[lo:lo + HEAD_DIM, :])
    h = h + attn + bout_ref[...]

    # --------------------------- MLP branch ------------------------------ #
    hn = layer_norm(h, ln_lyr_ref[2], ln_lyr_ref[3])
    ff = mm(hn, wfc_ref[...]) + bfc_ref[...]                      # [B, T_PAD, 4W]
    ff = ff * (1.0 / (1.0 + jnp.exp(-1.702 * ff)))                # QuickGELU (f32)
    h = h + mm(ff, wproj_ref[...]) + bproj_ref[...]
    h_ref[...] = h

    # ---- last grid step: ln_post on class token + output projection ----
    @pl.when(pl.program_id(0) == pl.num_programs(0) - 1)
    def _final():
        cls = layer_norm(h[:, 0, :], ln_post_ref[0], ln_post_ref[1])   # [B, W]
        out_ref[...] = mm(cls, proj_ref[...])                          # [B, OUT_DIM]


# ------------------------------ kernel wrapper ------------------------------ #

def _squeezed():
    # prefer the explicit Squeezed marker; fall back to legacy None squeezing
    return pl.Squeezed() if hasattr(pl, "Squeezed") else None


def _const_spec(shape):
    nd = len(shape)
    return pl.BlockSpec(shape, lambda l, _nd=nd: (0,) * _nd)


def _layer_spec(d0, d1):
    return pl.BlockSpec((_squeezed(), d0, d1), lambda l: (l, 0, 0))


@jax.jit
def clip_visual_forward(x, params):
    """x: [B, CIN, IMG, IMG] float32 (NCHW) -> [B, OUT_DIM] float32."""
    B = x.shape[0]

    # --- patch extraction (pure layout glue; conv stride == kernel == PATCH) ---
    patches = x.reshape(B, CIN, GRID, PATCH, GRID, PATCH)
    patches = patches.transpose(0, 2, 4, 1, 3, 5).reshape(B, NP, K_PATCH)
    # row 0 reserved for the class token, tail rows are sublane padding (zeros)
    patches = jnp.pad(patches, ((0, 0), (1, T_PAD - NTOK), (0, 0)))   # [B, T_PAD, K]

    # --- parameter preprocessing (one-time host/XLA glue) ---
    conv_w = params["conv1_w"].reshape(WIDTH, K_PATCH).T.astype(jnp.bfloat16)
    pos = params["positional_embedding"]
    tok_bias = jnp.concatenate(
        [(params["class_embedding"] + pos[0])[None, :], pos[1:]], axis=0)
    tok_bias = jnp.pad(tok_bias, ((0, T_PAD - NTOK), (0, 0)))          # [T_PAD, W]
    ln_pre = jnp.stack([params["ln_pre_g"], params["ln_pre_b"]])       # [2, W]
    ln_post = jnp.stack([params["ln_post_g"], params["ln_post_b"]])    # [2, W]
    proj = params["proj"].astype(jnp.bfloat16)                         # [W, OUT_DIM]

    stk = lambda name: jnp.stack([lp[name] for lp in params["layers"]])
    ln_lyr = jnp.stack([jnp.stack([lp["ln_1_g"], lp["ln_1_b"],
                                   lp["ln_2_g"], lp["ln_2_b"]])
                        for lp in params["layers"]])                   # [L, 4, W]
    wqkv = stk("in_proj_w").transpose(0, 2, 1).astype(jnp.bfloat16)    # [L, W, 3W]
    bqkv = stk("in_proj_b")[:, None, :]                                # [L, 1, 3W]
    wout = stk("out_proj_w").transpose(0, 2, 1).astype(jnp.bfloat16)   # [L, W, W]
    bout = stk("out_proj_b")[:, None, :]                               # [L, 1, W]
    wfc = stk("c_fc_w").transpose(0, 2, 1).astype(jnp.bfloat16)        # [L, W, 4W]
    bfc = stk("c_fc_b")[:, None, :]                                    # [L, 1, 4W]
    wproj = stk("c_proj_w").transpose(0, 2, 1).astype(jnp.bfloat16)    # [L, 4W, W]
    bproj = stk("c_proj_b")[:, None, :]                                # [L, 1, W]

    in_specs = [
        _const_spec((B, T_PAD, K_PATCH)),
        _const_spec((K_PATCH, WIDTH)),
        _const_spec((T_PAD, WIDTH)),
        _const_spec((2, WIDTH)),
        _const_spec((2, WIDTH)),
        _const_spec((WIDTH, OUT_DIM)),
        _layer_spec(4, WIDTH),
        _layer_spec(WIDTH, 3 * WIDTH),
        _layer_spec(1, 3 * WIDTH),
        _layer_spec(WIDTH, WIDTH),
        _layer_spec(1, WIDTH),
        _layer_spec(WIDTH, 4 * WIDTH),
        _layer_spec(1, 4 * WIDTH),
        _layer_spec(4 * WIDTH, WIDTH),
        _layer_spec(1, WIDTH),
    ]
    out_spec = pl.BlockSpec((B, OUT_DIM), lambda l: (0, 0))

    return pl.pallas_call(
        _clip_vit_kernel,
        out_shape=jax.ShapeDtypeStruct((B, OUT_DIM), jnp.float32),
        grid_spec=pltpu.PrefetchScalarGridSpec(
            num_scalar_prefetch=0,
            grid=(LAYERS,),
            in_specs=in_specs,
            out_specs=out_spec,
            scratch_shapes=[pltpu.VMEM((B, T_PAD, WIDTH), jnp.float32)],
        ),
        compiler_params=pltpu.CompilerParams(
            dimension_semantics=("arbitrary",),   # layer loop carries VMEM state
        ),
    )(patches, conv_w, tok_bias, ln_pre, ln_post, proj,
      ln_lyr, wqkv, bqkv, wout, bout, wfc, bfc, wproj, bproj)


# -------------------------------- parameters -------------------------------- #

def init_params(key):
    ks = iter(jax.random.split(key, 64))
    r = lambda shape, s=0.02: (s * jax.random.normal(next(ks), shape)).astype(jnp.float32)
    params = {
        "conv1_w": r((WIDTH, CIN, PATCH, PATCH)),          # no bias in CLIP conv1
        "class_embedding": r((WIDTH,)),
        "positional_embedding": r((NTOK, WIDTH)),
        "ln_pre_g": jnp.ones((WIDTH,), jnp.float32),
        "ln_pre_b": jnp.zeros((WIDTH,), jnp.float32),
        "ln_post_g": jnp.ones((WIDTH,), jnp.float32),
        "ln_post_b": jnp.zeros((WIDTH,), jnp.float32),
        "proj": r((WIDTH, OUT_DIM)),
        "layers": [],
    }
    for _ in range(LAYERS):
        params["layers"].append({
            "ln_1_g": jnp.ones((WIDTH,), jnp.float32),
            "ln_1_b": jnp.zeros((WIDTH,), jnp.float32),
            "in_proj_w": r((3 * WIDTH, WIDTH)),            # torch MHA in_proj_weight
            "in_proj_b": r((3 * WIDTH,)),
            "out_proj_w": r((WIDTH, WIDTH)),               # torch Linear weight [out, in]
            "out_proj_b": r((WIDTH,)),
            "ln_2_g": jnp.ones((WIDTH,), jnp.float32),
            "ln_2_b": jnp.zeros((WIDTH,), jnp.float32),
            "c_fc_w": r((4 * WIDTH, WIDTH)),
            "c_fc_b": r((4 * WIDTH,)),
            "c_proj_w": r((WIDTH, 4 * WIDTH)),
            "c_proj_b": r((WIDTH,)),
        })
    return params


# ----------------------------------- main ------------------------------------ #

if __name__ == "__main__":
    key = jax.random.PRNGKey(0)
    k_params, k_x = jax.random.split(key)
    params = init_params(k_params)
    x = jax.random.normal(k_x, (BATCH, CIN, IMG, IMG), dtype=jnp.float32)

    out = clip_visual_forward(x, params)
    out = jax.block_until_ready(out)
    assert out.shape == (BATCH, OUT_DIM)
    assert bool(jnp.all(jnp.isfinite(out)))
    print("KERNEL_OK")
</pallas_src>

<mosaic_0001>
module attributes {stable_mosaic.version = 11 : i64} {
  func.func @_clip_vit_kernel(%arg0: i32, %arg1: memref<2x8x192xf32, #tpu.memory_space<vmem>>, %arg2: memref<192x32xbf16, #tpu.memory_space<vmem>>, %arg3: memref<8x32xf32, #tpu.memory_space<vmem>>, %arg4: memref<2x32xf32, #tpu.memory_space<vmem>>, %arg5: memref<2x32xf32, #tpu.memory_space<vmem>>, %arg6: memref<32x16xbf16, #tpu.memory_space<vmem>>, %arg7: memref<1x4x32xf32, #tpu.memory_space<vmem>>, %arg8: memref<1x32x96xbf16, #tpu.memory_space<vmem>>, %arg9: memref<1x1x96xf32, #tpu.memory_space<vmem>>, %arg10: memref<1x32x32xbf16, #tpu.memory_space<vmem>>, %arg11: memref<1x1x32xf32, #tpu.memory_space<vmem>>, %arg12: memref<1x32x128xbf16, #tpu.memory_space<vmem>>, %arg13: memref<1x1x128xf32, #tpu.memory_space<vmem>>, %arg14: memref<1x128x32xbf16, #tpu.memory_space<vmem>>, %arg15: memref<1x1x32xf32, #tpu.memory_space<vmem>>, %arg16: memref<2x16xf32, #tpu.memory_space<vmem>>, %arg17: memref<2x8x32xf32, #tpu.memory_space<vmem>>) attributes {dimension_semantics = [#tpu.dimension_semantics<arbitrary>], iteration_bounds = array<i64: 2>, scalar_prefetch = 0 : i64, scratch_operands = 1 : i64, tpu.core_type = #tpu.core_type<tc>, window_params = [{pipeline_mode = #tpu.pipeline_mode<synchronous>, transform_indices = @transform_0, window_bounds = array<i64: 2, 8, 192>}, {pipeline_mode = #tpu.pipeline_mode<synchronous>, transform_indices = @transform_1, window_bounds = array<i64: 192, 32>}, {pipeline_mode = #tpu.pipeline_mode<synchronous>, transform_indices = @transform_2, window_bounds = array<i64: 8, 32>}, {pipeline_mode = #tpu.pipeline_mode<synchronous>, transform_indices = @transform_3, window_bounds = array<i64: 2, 32>}, {pipeline_mode = #tpu.pipeline_mode<synchronous>, transform_indices = @transform_4, window_bounds = array<i64: 2, 32>}, {pipeline_mode = #tpu.pipeline_mode<synchronous>, transform_indices = @transform_5, window_bounds = array<i64: 32, 16>}, {transform_indices = @transform_6, window_bounds = array<i64: 1, 4, 32>}, {transform_indices = @transform_7, window_bounds = array<i64: 1, 32, 96>}, {transform_indices = @transform_8, window_bounds = array<i64: 1, 1, 96>}, {transform_indices = @transform_9, window_bounds = array<i64: 1, 32, 32>}, {transform_indices = @transform_10, window_bounds = array<i64: 1, 1, 32>}, {transform_indices = @transform_11, window_bounds = array<i64: 1, 32, 128>}, {transform_indices = @transform_12, window_bounds = array<i64: 1, 1, 128>}, {transform_indices = @transform_13, window_bounds = array<i64: 1, 128, 32>}, {transform_indices = @transform_14, window_bounds = array<i64: 1, 1, 32>}, {pipeline_mode = #tpu.pipeline_mode<synchronous>, transform_indices = @transform_15, window_bounds = array<i64: 2, 16>}]} {
    %c0_i32 = arith.constant 0 : i32
    %0 = arith.cmpi eq, %arg0, %c0_i32 : i32
    %1 = arith.extui %0 : i1 to i32
    %c0_i32_0 = arith.constant 0 : i32
    %2 = arith.cmpi ne, %1, %c0_i32_0 : i32
    scf.if %2 {
      %c0_85 = arith.constant 0 : index
      %c0_86 = arith.constant 0 : index
      %c0_87 = arith.constant 0 : index
      %232 = vector.load %arg1[%c0_85, %c0_86, %c0_87] : memref<2x8x192xf32, #tpu.memory_space<vmem>>, vector<2x8x192xf32>
      %c0_88 = arith.constant 0 : index
      %c0_89 = arith.constant 0 : index
      %233 = vector.load %arg2[%c0_88, %c0_89] : memref<192x32xbf16, #tpu.memory_space<vmem>>, vector<192x32xbf16>
      %234 = vector.shape_cast %232 : vector<2x8x192xf32> to vector<16x192xf32>
      %235 = arith.truncf %234 : vector<16x192xf32> to vector<16x192xbf16>
      %cst_90 = arith.constant dense<0.000000e+00> : vector<16x32xf32>
      %236 = tpu.matmul %235, %233, %cst_90 {dimension_numbers = #tpu.dot_dimension_numbers<[1], [0], [0], [1], [0, 0, 1, 1], [], []>} : vector<16x192xbf16>, vector<192x32xbf16>, vector<16x32xf32> -> vector<16x32xf32>
      %237 = vector.shape_cast %236 : vector<16x32xf32> to vector<2x8x32xf32>
      %c0_91 = arith.constant 0 : index
      %c0_92 = arith.constant 0 : index
      %238 = vector.load %arg3[%c0_91, %c0_92] : memref<8x32xf32, #tpu.memory_space<vmem>>, vector<8x32xf32>
      %239 = vector.shape_cast %238 : vector<8x32xf32> to vector<1x8x32xf32>
      %240 = vector.broadcast %239 : vector<1x8x32xf32> to vector<2x8x32xf32>
      %241 = arith.addf %237, %240 : vector<2x8x32xf32>
      %c0_93 = arith.constant 0 : index
      %c0_94 = arith.constant 0 : index
      %242 = vector.load %arg4[%c0_93, %c0_94] : memref<2x32xf32, #tpu.memory_space<vmem>>, vector<1x32xf32>
      %243 = vector.shape_cast %242 : vector<1x32xf32> to vector<32xf32>
      %c1_95 = arith.constant 1 : index
      %c0_96 = arith.constant 0 : index
      %244 = vector.load %arg4[%c1_95, %c0_96] : memref<2x32xf32, #tpu.memory_space<vmem>>, vector<1x32xf32>
      %245 = vector.shape_cast %244 : vector<1x32xf32> to vector<32xf32>
      %cst_97 = arith.constant dense<0.000000e+00> : vector<2x8xf32>
      %246 = vector.multi_reduction <add>, %241, %cst_97 [2] : vector<2x8x32xf32> to vector<2x8xf32>
      %247 = vector.shape_cast %246 : vector<2x8xf32> to vector<2x8x1xf32>
      %cst_98 = arith.constant 3.200000e+01 : f32
      %248 = vector.broadcast %cst_98 : f32 to vector<2x8x1xf32>
      %249 = arith.divf %247, %248 : vector<2x8x1xf32>
      %250 = vector.broadcast %249 : vector<2x8x1xf32> to vector<2x8x32xf32>
      %251 = arith.subf %241, %250 : vector<2x8x32xf32>
      %252 = arith.mulf %251, %251 : vector<2x8x32xf32>
      %cst_99 = arith.constant dense<0.000000e+00> : vector<2x8xf32>
      %253 = vector.multi_reduction <add>, %252, %cst_99 [2] : vector<2x8x32xf32> to vector<2x8xf32>
      %254 = vector.shape_cast %253 : vector<2x8xf32> to vector<2x8x1xf32>
      %cst_100 = arith.constant 3.200000e+01 : f32
      %255 = vector.broadcast %cst_100 : f32 to vector<2x8x1xf32>
      %256 = arith.divf %254, %255 : vector<2x8x1xf32>
      %cst_101 = arith.constant 9.99999974E-6 : f32
      %257 = vector.broadcast %cst_101 : f32 to vector<2x8x1xf32>
      %258 = arith.addf %256, %257 : vector<2x8x1xf32>
      %259 = math.rsqrt %258 : vector<2x8x1xf32>
      %260 = vector.broadcast %259 : vector<2x8x1xf32> to vector<2x8x32xf32>
      %261 = arith.mulf %251, %260 : vector<2x8x32xf32>
      %262 = vector.shape_cast %243 : vector<32xf32> to vector<1x1x32xf32>
      %263 = vector.broadcast %262 : vector<1x1x32xf32> to vector<2x8x32xf32>
      %264 = arith.mulf %261, %263 : vector<2x8x32xf32>
      %265 = vector.shape_cast %245 : vector<32xf32> to vector<1x1x32xf32>
      %266 = vector.broadcast %265 : vector<1x1x32xf32> to vector<2x8x32xf32>
      %267 = arith.addf %264, %266 : vector<2x8x32xf32>
      %c0_102 = arith.constant 0 : index
      %c0_103 = arith.constant 0 : index
      %c0_104 = arith.constant 0 : index
      %268 = vector.load %arg17[%c0_102, %c0_103, %c0_104] : memref<2x8x32xf32, #tpu.memory_space<vmem>>, vector<2x8x32xf32>
      tpu.vector_store %arg17[%c0_102, %c0_103, %c0_104], %267 {strides = array<i32>} : memref<2x8x32xf32, #tpu.memory_space<vmem>>, vector<2x8x32xf32>,
    } else {
    }
    %c0 = arith.constant 0 : index
    %c0_1 = arith.constant 0 : index
    %c0_2 = arith.constant 0 : index
    %3 = vector.load %arg17[%c0, %c0_1, %c0_2] : memref<2x8x32xf32, #tpu.memory_space<vmem>>, vector<2x8x32xf32>
    %c0_3 = arith.constant 0 : index
    %c0_4 = arith.constant 0 : index
    %c0_5 = arith.constant 0 : index
    %4 = vector.load %arg7[%c0_3, %c0_4, %c0_5] : memref<1x4x32xf32, #tpu.memory_space<vmem>>, vector<1x1x32xf32>
    %5 = vector.shape_cast %4 : vector<1x1x32xf32> to vector<32xf32>
    %c0_6 = arith.constant 0 : index
    %c1 = arith.constant 1 : index
    %c0_7 = arith.constant 0 : index
    %6 = vector.load %arg7[%c0_6, %c1, %c0_7] : memref<1x4x32xf32, #tpu.memory_space<vmem>>, vector<1x1x32xf32>
    %7 = vector.shape_cast %6 : vector<1x1x32xf32> to vector<32xf32>
    %cst = arith.constant dense<0.000000e+00> : vector<2x8xf32>
    %8 = vector.multi_reduction <add>, %3, %cst [2] : vector<2x8x32xf32> to vector<2x8xf32>
    %9 = vector.shape_cast %8 : vector<2x8xf32> to vector<2x8x1xf32>
    %cst_8 = arith.constant 3.200000e+01 : f32
    %10 = vector.broadcast %cst_8 : f32 to vector<2x8x1xf32>
    %11 = arith.divf %9, %10 : vector<2x8x1xf32>
    %12 = vector.broadcast %11 : vector<2x8x1xf32> to vector<2x8x32xf32>
    %13 = arith.subf %3, %12 : vector<2x8x32xf32>
    %14 = arith.mulf %13, %13 : vector<2x8x32xf32>
    %cst_9 = arith.constant dense<0.000000e+00> : vector<2x8xf32>
    %15 = vector.multi_reduction <add>, %14, %cst_9 [2] : vector<2x8x32xf32> to vector<2x8xf32>
    %16 = vector.shape_cast %15 : vector<2x8xf32> to vector<2x8x1xf32>
    %cst_10 = arith.constant 3.200000e+01 : f32
    %17 = vector.broadcast %cst_10 : f32 to vector<2x8x1xf32>
    %18 = arith.divf %16, %17 : vector<2x8x1xf32>
    %cst_11 = arith.constant 9.99999974E-6 : f32
    %19 = vector.broadcast %cst_11 : f32 to vector<2x8x1xf32>
    %20 = arith.addf %18, %19 : vector<2x8x1xf32>
    %21 = math.rsqrt %20 : vector<2x8x1xf32>
    %22 = vector.broadcast %21 : vector<2x8x1xf32> to vector<2x8x32xf32>
    %23 = arith.mulf %13, %22 : vector<2x8x32xf32>
    %24 = vector.shape_cast %5 : vector<32xf32> to vector<1x1x32xf32>
    %25 = vector.broadcast %24 : vector<1x1x32xf32> to vector<2x8x32xf32>
    %26 = arith.mulf %23, %25 : vector<2x8x32xf32>
    %27 = vector.shape_cast %7 : vector<32xf32> to vector<1x1x32xf32>
    %28 = vector.broadcast %27 : vector<1x1x32xf32> to vector<2x8x32xf32>
    %29 = arith.addf %26, %28 : vector<2x8x32xf32>
    %c0_12 = arith.constant 0 : index
    %c0_13 = arith.constant 0 : index
    %c0_14 = arith.constant 0 : index
    %30 = vector.load %arg8[%c0_12, %c0_13, %c0_14] : memref<1x32x96xbf16, #tpu.memory_space<vmem>>, vector<1x32x96xbf16>
    %31 = vector.shape_cast %30 : vector<1x32x96xbf16> to vector<32x96xbf16>
    %32 = vector.shape_cast %29 : vector<2x8x32xf32> to vector<16x32xf32>
    %33 = arith.truncf %32 : vector<16x32xf32> to vector<16x32xbf16>
    %cst_15 = arith.constant dense<0.000000e+00> : vector<16x96xf32>
    %34 = tpu.matmul %33, %31, %cst_15 {dimension_numbers = #tpu.dot_dimension_numbers<[1], [0], [0], [1], [0, 0, 1, 1], [], []>} : vector<16x32xbf16>, vector<32x96xbf16>, vector<16x96xf32> -> vector<16x96xf32>
    %35 = vector.shape_cast %34 : vector<16x96xf32> to vector<2x8x96xf32>
    %c0_16 = arith.constant 0 : index
    %c0_17 = arith.constant 0 : index
    %c0_18 = arith.constant 0 : index
    %36 = vector.load %arg9[%c0_16, %c0_17, %c0_18] : memref<1x1x96xf32, #tpu.memory_space<vmem>>, vector<1x1x96xf32>
    %37 = vector.shape_cast %36 : vector<1x1x96xf32> to vector<1x96xf32>
    %38 = vector.shape_cast %37 : vector<1x96xf32> to vector<1x1x96xf32>
    %39 = vector.broadcast %38 : vector<1x1x96xf32> to vector<2x8x96xf32>
    %40 = arith.addf %35, %39 : vector<2x8x96xf32>
    %41 = vector.extract_strided_slice %40 {offsets = [0, 0, 0], sizes = [2, 8, 32], strides = [1, 1, 1]} : vector<2x8x96xf32> to vector<2x8x32xf32>
    %cst_19 = arith.constant 0.353553385 : f32
    %42 = vector.broadcast %cst_19 : f32 to vector<2x8x32xf32>
    %43 = arith.mulf %41, %42 : vector<2x8x32xf32>
    %44 = vector.extract_strided_slice %40 {offsets = [0, 0, 32], sizes = [2, 8, 32], strides = [1, 1, 1]} : vector<2x8x96xf32> to vector<2x8x32xf32>
    %45 = vector.extract_strided_slice %40 {offsets = [0, 0, 64], sizes = [2, 8, 32], strides = [1, 1, 1]} : vector<2x8x96xf32> to vector<2x8x32xf32>
    %46 = tpu.iota {dimensions = array<i32: 2>} : vector<1x1x8xi32>
    %c5_i32 = arith.constant 5 : i32
    %47 = vector.broadcast %c5_i32 : i32 to vector<1x1x8xi32>
    %48 = arith.cmpi slt, %46, %47 : vector<1x1x8xi32>
    %cst_20 = arith.constant 0.000000e+00 : f32
    %cst_21 = arith.constant -1.000000e+30 : f32
    %49 = vector.broadcast %cst_20 : f32 to vector<1x1x8xf32>
    %50 = vector.broadcast %cst_21 : f32 to vector<1x1x8xf32>
    %51 = arith.select %48, %49, %50 : vector<1x1x8xi1>, vector<1x1x8xf32>
    %cst_22 = arith.constant 0.000000e+00 : f32
    %52 = vector.broadcast %cst_22 : f32 to vector<2x8x32xf32>
    %53 = vector.extract_strided_slice %43 {offsets = [0, 0, 0], sizes = [2, 8, 8], strides = [1, 1, 1]} : vector<2x8x32xf32> to vector<2x8x8xf32>
    %54 = arith.truncf %53 : vector<2x8x8xf32> to vector<2x8x8xbf16>
    %55 = vector.extract_strided_slice %44 {offsets = [0, 0, 0], sizes = [2, 8, 8], strides = [1, 1, 1]} : vector<2x8x32xf32> to vector<2x8x8xf32>
    %56 = arith.truncf %55 : vector<2x8x8xf32> to vector<2x8x8xbf16>
    %57 = vector.extract_strided_slice %45 {offsets = [0, 0, 0], sizes = [2, 8, 8], strides = [1, 1, 1]} : vector<2x8x32xf32> to vector<2x8x8xf32>
    %58 = arith.truncf %57 : vector<2x8x8xf32> to vector<2x8x8xbf16>
    %cst_23 = arith.constant dense<0.000000e+00> : vector<2x8x8xf32>
    %59 = tpu.matmul %54, %56, %cst_23 {dimension_numbers = #tpu.dot_dimension_numbers<[2], [2], [1], [1], [0, 0, 0, 1, 1, 1], [0], [0]>} : vector<2x8x8xbf16>, vector<2x8x8xbf16>, vector<2x8x8xf32> -> vector<2x8x8xf32>
    %60 = vector.broadcast %51 : vector<1x1x8xf32> to vector<2x8x8xf32>
    %61 = arith.addf %59, %60 : vector<2x8x8xf32>
    %cst_24 = arith.constant dense<0xFF800000> : vector<2x8xf32>
    %62 = vector.multi_reduction <maximumf>, %61, %cst_24 [2] : vector<2x8x8xf32> to vector<2x8xf32>
    %63 = vector.shape_cast %62 : vector<2x8xf32> to vector<2x8x1xf32>
    %64 = vector.broadcast %63 : vector<2x8x1xf32> to vector<2x8x8xf32>
    %65 = arith.subf %61, %64 : vector<2x8x8xf32>
    %66 = math.exp %65 : vector<2x8x8xf32>
    %cst_25 = arith.constant dense<0.000000e+00> : vector<2x8xf32>
    %67 = vector.multi_reduction <add>, %66, %cst_25 [2] : vector<2x8x8xf32> to vector<2x8xf32>
    %68 = vector.shape_cast %67 : vector<2x8xf32> to vector<2x8x1xf32>
    %69 = tpu.reciprocal %68 {approx = true} : vector<2x8x1xf32> -> vector<2x8x1xf32>
    %70 = vector.broadcast %69 : vector<2x8x1xf32> to vector<2x8x8xf32>
    %71 = arith.mulf %66, %70 : vector<2x8x8xf32>
    %72 = arith.truncf %71 : vector<2x8x8xf32> to vector<2x8x8xbf16>
    %cst_26 = arith.constant dense<0.000000e+00> : vector<2x8x8xf32>
    %73 = tpu.matmul %72, %58, %cst_26 {dimension_numbers = #tpu.dot_dimension_numbers<[2], [1], [1], [2], [0, 0, 0, 1, 1, 2], [0], [0]>} : vector<2x8x8xbf16>, vector<2x8x8xbf16>, vector<2x8x8xf32> -> vector<2x8x8xf32>
    %c0_27 = arith.constant 0 : index
    %c0_28 = arith.constant 0 : index
    %c0_29 = arith.constant 0 : index
    %74 = vector.load %arg10[%c0_27, %c0_28, %c0_29] : memref<1x32x32xbf16, #tpu.memory_space<vmem>>, vector<1x8x32xbf16>
    %75 = vector.shape_cast %74 : vector<1x8x32xbf16> to vector<8x32xbf16>
    %76 = vector.shape_cast %73 : vector<2x8x8xf32> to vector<16x8xf32>
    %77 = arith.truncf %76 : vector<16x8xf32> to vector<16x8xbf16>
    %cst_30 = arith.constant dense<0.000000e+00> : vector<16x32xf32>
    %78 = tpu.matmul %77, %75, %cst_30 {dimension_numbers = #tpu.dot_dimension_numbers<[1], [0], [0], [1], [0, 0, 1, 1], [], []>} : vector<16x8xbf16>, vector<8x32xbf16>, vector<16x32xf32> -> vector<16x32xf32>
    %79 = vector.shape_cast %78 : vector<16x32xf32> to vector<2x8x32xf32>
    %80 = arith.addf %52, %79 : vector<2x8x32xf32>
    %81 = vector.extract_strided_slice %43 {offsets = [0, 0, 8], sizes = [2, 8, 8], strides = [1, 1, 1]} : vector<2x8x32xf32> to vector<2x8x8xf32>
    %82 = arith.truncf %81 : vector<2x8x8xf32> to vector<2x8x8xbf16>
    %83 = vector.extract_strided_slice %44 {offsets = [0, 0, 8], sizes = [2, 8, 8], strides = [1, 1, 1]} : vector<2x8x32xf32> to vector<2x8x8xf32>
    %84 = arith.truncf %83 : vector<2x8x8xf32> to vector<2x8x8xbf16>
    %85 = vector.extract_strided_slice %45 {offsets = [0, 0, 8], sizes = [2, 8, 8], strides = [1, 1, 1]} : vector<2x8x32xf32> to vector<2x8x8xf32>
    %86 = arith.truncf %85 : vector<2x8x8xf32> to vector<2x8x8xbf16>
    %cst_31 = arith.constant dense<0.000000e+00> : vector<2x8x8xf32>
    %87 = tpu.matmul %82, %84, %cst_31 {dimension_numbers = #tpu.dot_dimension_numbers<[2], [2], [1], [1], [0, 0, 0, 1, 1, 1], [0], [0]>} : vector<2x8x8xbf16>, vector<2x8x8xbf16>, vector<2x8x8xf32> -> vector<2x8x8xf32>
    %88 = vector.broadcast %51 : vector<1x1x8xf32> to vector<2x8x8xf32>
    %89 = arith.addf %87, %88 : vector<2x8x8xf32>
    %cst_32 = arith.constant dense<0xFF800000> : vector<2x8xf32>
    %90 = vector.multi_reduction <maximumf>, %89, %cst_32 [2] : vector<2x8x8xf32> to vector<2x8xf32>
    %91 = vector.shape_cast %90 : vector<2x8xf32> to vector<2x8x1xf32>
    %92 = vector.broadcast %91 : vector<2x8x1xf32> to vector<2x8x8xf32>
    %93 = arith.subf %89, %92 : vector<2x8x8xf32>
    %94 = math.exp %93 : vector<2x8x8xf32>
    %cst_33 = arith.constant dense<0.000000e+00> : vector<2x8xf32>
    %95 = vector.multi_reduction <add>, %94, %cst_33 [2] : vector<2x8x8xf32> to vector<2x8xf32>
    %96 = vector.shape_cast %95 : vector<2x8xf32> to vector<2x8x1xf32>
    %97 = tpu.reciprocal %96 {approx = true} : vector<2x8x1xf32> -> vector<2x8x1xf32>
    %98 = vector.broadcast %97 : vector<2x8x1xf32> to vector<2x8x8xf32>
    %99 = arith.mulf %94, %98 : vector<2x8x8xf32>
    %100 = arith.truncf %99 : vector<2x8x8xf32> to vector<2x8x8xbf16>
    %cst_34 = arith.constant dense<0.000000e+00> : vector<2x8x8xf32>
    %101 = tpu.matmul %100, %86, %cst_34 {dimension_numbers = #tpu.dot_dimension_numbers<[2], [1], [1], [2], [0, 0, 0, 1, 1, 2], [0], [0]>} : vector<2x8x8xbf16>, vector<2x8x8xbf16>, vector<2x8x8xf32> -> vector<2x8x8xf32>
    %c0_35 = arith.constant 0 : index
    %c8 = arith.constant 8 : index
    %c0_36 = arith.constant 0 : index
    %102 = vector.load %arg10[%c0_35, %c8, %c0_36] : memref<1x32x32xbf16, #tpu.memory_space<vmem>>, vector<1x8x32xbf16>
    %103 = vector.shape_cast %102 : vector<1x8x32xbf16> to vector<8x32xbf16>
    %104 = vector.shape_cast %101 : vector<2x8x8xf32> to vector<16x8xf32>
    %105 = arith.truncf %104 : vector<16x8xf32> to vector<16x8xbf16>
    %cst_37 = arith.constant dense<0.000000e+00> : vector<16x32xf32>
    %106 = tpu.matmul %105, %103, %cst_37 {dimension_numbers = #tpu.dot_dimension_numbers<[1], [0], [0], [1], [0, 0, 1, 1], [], []>} : vector<16x8xbf16>, vector<8x32xbf16>, vector<16x32xf32> -> vector<16x32xf32>
    %107 = vector.shape_cast %106 : vector<16x32xf32> to vector<2x8x32xf32>
    %108 = arith.addf %80, %107 : vector<2x8x32xf32>
    %109 = vector.extract_strided_slice %43 {offsets = [0, 0, 16], sizes = [2, 8, 8], strides = [1, 1, 1]} : vector<2x8x32xf32> to vector<2x8x8xf32>
    %110 = arith.truncf %109 : vector<2x8x8xf32> to vector<2x8x8xbf16>
    %111 = vector.extract_strided_slice %44 {offsets = [0, 0, 16], sizes = [2, 8, 8], strides = [1, 1, 1]} : vector<2x8x32xf32> to vector<2x8x8xf32>
    %112 = arith.truncf %111 : vector<2x8x8xf32> to vector<2x8x8xbf16>
    %113 = vector.extract_strided_slice %45 {offsets = [0, 0, 16], sizes = [2, 8, 8], strides = [1, 1, 1]} : vector<2x8x32xf32> to vector<2x8x8xf32>
    %114 = arith.truncf %113 : vector<2x8x8xf32> to vector<2x8x8xbf16>
    %cst_38 = arith.constant dense<0.000000e+00> : vector<2x8x8xf32>
    %115 = tpu.matmul %110, %112, %cst_38 {dimension_numbers = #tpu.dot_dimension_numbers<[2], [2], [1], [1], [0, 0, 0, 1, 1, 1], [0], [0]>} : vector<2x8x8xbf16>, vector<2x8x8xbf16>, vector<2x8x8xf32> -> vector<2x8x8xf32>
    %116 = vector.broadcast %51 : vector<1x1x8xf32> to vector<2x8x8xf32>
    %117 = arith.addf %115, %116 : vector<2x8x8xf32>
    %cst_39 = arith.constant dense<0xFF800000> : vector<2x8xf32>
    %118 = vector.multi_reduction <maximumf>, %117, %cst_39 [2] : vector<2x8x8xf32> to vector<2x8xf32>
    %119 = vector.shape_cast %118 : vector<2x8xf32> to vector<2x8x1xf32>
    %120 = vector.broadcast %119 : vector<2x8x1xf32> to vector<2x8x8xf32>
    %121 = arith.subf %117, %120 : vector<2x8x8xf32>
    %122 = math.exp %121 : vector<2x8x8xf32>
    %cst_40 = arith.constant dense<0.000000e+00> : vector<2x8xf32>
    %123 = vector.multi_reduction <add>, %122, %cst_40 [2] : vector<2x8x8xf32> to vector<2x8xf32>
    %124 = vector.shape_cast %123 : vector<2x8xf32> to vector<2x8x1xf32>
    %125 = tpu.reciprocal %124 {approx = true} : vector<2x8x1xf32> -> vector<2x8x1xf32>
    %126 = vector.broadcast %125 : vector<2x8x1xf32> to vector<2x8x8xf32>
    %127 = arith.mulf %122, %126 : vector<2x8x8xf32>
    %128 = arith.truncf %127 : vector<2x8x8xf32> to vector<2x8x8xbf16>
    %cst_41 = arith.constant dense<0.000000e+00> : vector<2x8x8xf32>
    %129 = tpu.matmul %128, %114, %cst_41 {dimension_numbers = #tpu.dot_dimension_numbers<[2], [1], [1], [2], [0, 0, 0, 1, 1, 2], [0], [0]>} : vector<2x8x8xbf16>, vector<2x8x8xbf16>, vector<2x8x8xf32> -> vector<2x8x8xf32>
    %c0_42 = arith.constant 0 : index
    %c16 = arith.constant 16 : index
    %c0_43 = arith.constant 0 : index
    %130 = vector.load %arg10[%c0_42, %c16, %c0_43] : memref<1x32x32xbf16, #tpu.memory_space<vmem>>, vector<1x8x32xbf16>
    %131 = vector.shape_cast %130 : vector<1x8x32xbf16> to vector<8x32xbf16>
    %132 = vector.shape_cast %129 : vector<2x8x8xf32> to vector<16x8xf32>
    %133 = arith.truncf %132 : vector<16x8xf32> to vector<16x8xbf16>
    %cst_44 = arith.constant dense<0.000000e+00> : vector<16x32xf32>
    %134 = tpu.matmul %133, %131, %cst_44 {dimension_numbers = #tpu.dot_dimension_numbers<[1], [0], [0], [1], [0, 0, 1, 1], [], []>} : vector<16x8xbf16>, vector<8x32xbf16>, vector<16x32xf32> -> vector<16x32xf32>
    %135 = vector.shape_cast %134 : vector<16x32xf32> to vector<2x8x32xf32>
    %136 = arith.addf %108, %135 : vector<2x8x32xf32>
    %137 = vector.extract_strided_slice %43 {offsets = [0, 0, 24], sizes = [2, 8, 8], strides = [1, 1, 1]} : vector<2x8x32xf32> to vector<2x8x8xf32>
    %138 = arith.truncf %137 : vector<2x8x8xf32> to vector<2x8x8xbf16>
    %139 = vector.extract_strided_slice %44 {offsets = [0, 0, 24], sizes = [2, 8, 8], strides = [1, 1, 1]} : vector<2x8x32xf32> to vector<2x8x8xf32>
    %140 = arith.truncf %139 : vector<2x8x8xf32> to vector<2x8x8xbf16>
    %141 = vector.extract_strided_slice %45 {offsets = [0, 0, 24], sizes = [2, 8, 8], strides = [1, 1, 1]} : vector<2x8x32xf32> to vector<2x8x8xf32>
    %142 = arith.truncf %141 : vector<2x8x8xf32> to vector<2x8x8xbf16>
    %cst_45 = arith.constant dense<0.000000e+00> : vector<2x8x8xf32>
    %143 = tpu.matmul %138, %140, %cst_45 {dimension_numbers = #tpu.dot_dimension_numbers<[2], [2], [1], [1], [0, 0, 0, 1, 1, 1], [0], [0]>} : vector<2x8x8xbf16>, vector<2x8x8xbf16>, vector<2x8x8xf32> -> vector<2x8x8xf32>
    %144 = vector.broadcast %51 : vector<1x1x8xf32> to vector<2x8x8xf32>
    %145 = arith.addf %143, %144 : vector<2x8x8xf32>
    %cst_46 = arith.constant dense<0xFF800000> : vector<2x8xf32>
    %146 = vector.multi_reduction <maximumf>, %145, %cst_46 [2] : vector<2x8x8xf32> to vector<2x8xf32>
    %147 = vector.shape_cast %146 : vector<2x8xf32> to vector<2x8x1xf32>
    %148 = vector.broadcast %147 : vector<2x8x1xf32> to vector<2x8x8xf32>
    %149 = arith.subf %145, %148 : vector<2x8x8xf32>
    %150 = math.exp %149 : vector<2x8x8xf32>
    %cst_47 = arith.constant dense<0.000000e+00> : vector<2x8xf32>
    %151 = vector.multi_reduction <add>, %150, %cst_47 [2] : vector<2x8x8xf32> to vector<2x8xf32>
    %152 = vector.shape_cast %151 : vector<2x8xf32> to vector<2x8x1xf32>
    %153 = tpu.reciprocal %152 {approx = true} : vector<2x8x1xf32> -> vector<2x8x1xf32>
    %154 = vector.broadcast %153 : vector<2x8x1xf32> to vector<2x8x8xf32>
    %155 = arith.mulf %150, %154 : vector<2x8x8xf32>
    %156 = arith.truncf %155 : vector<2x8x8xf32> to vector<2x8x8xbf16>
    %cst_48 = arith.constant dense<0.000000e+00> : vector<2x8x8xf32>
    %157 = tpu.matmul %156, %142, %cst_48 {dimension_numbers = #tpu.dot_dimension_numbers<[2], [1], [1], [2], [0, 0, 0, 1, 1, 2], [0], [0]>} : vector<2x8x8xbf16>, vector<2x8x8xbf16>, vector<2x8x8xf32> -> vector<2x8x8xf32>
    %c0_49 = arith.constant 0 : index
    %c24 = arith.constant 24 : index
    %c0_50 = arith.constant 0 : index
    %158 = vector.load %arg10[%c0_49, %c24, %c0_50] : memref<1x32x32xbf16, #tpu.memory_space<vmem>>, vector<1x8x32xbf16>
    %159 = vector.shape_cast %158 : vector<1x8x32xbf16> to vector<8x32xbf16>
    %160 = vector.shape_cast %157 : vector<2x8x8xf32> to vector<16x8xf32>
    %161 = arith.truncf %160 : vector<16x8xf32> to vector<16x8xbf16>
    %cst_51 = arith.constant dense<0.000000e+00> : vector<16x32xf32>
    %162 = tpu.matmul %161, %159, %cst_51 {dimension_numbers = #tpu.dot_dimension_numbers<[1], [0], [0], [1], [0, 0, 1, 1], [], []>} : vector<16x8xbf16>, vector<8x32xbf16>, vector<16x32xf32> -> vector<16x32xf32>
    %163 = vector.shape_cast %162 : vector<16x32xf32> to vector<2x8x32xf32>
    %164 = arith.addf %136, %163 : vector<2x8x32xf32>
    %165 = arith.addf %3, %164 : vector<2x8x32xf32>
    %c0_52 = arith.constant 0 : index
    %c0_53 = arith.constant 0 : index
    %c0_54 = arith.constant 0 : index
    %166 = vector.load %arg11[%c0_52, %c0_53, %c0_54] : memref<1x1x32xf32, #tpu.memory_space<vmem>>, vector<1x1x32xf32>
    %167 = vector.shape_cast %166 : vector<1x1x32xf32> to vector<1x32xf32>
    %168 = vector.shape_cast %167 : vector<1x32xf32> to vector<1x1x32xf32>
    %169 = vector.broadcast %168 : vector<1x1x32xf32> to vector<2x8x32xf32>
    %170 = arith.addf %165, %169 : vector<2x8x32xf32>
    %c0_55 = arith.constant 0 : index
    %c2 = arith.constant 2 : index
    %c0_56 = arith.constant 0 : index
    %171 = vector.load %arg7[%c0_55, %c2, %c0_56] : memref<1x4x32xf32, #tpu.memory_space<vmem>>, vector<1x1x32xf32>
    %172 = vector.shape_cast %171 : vector<1x1x32xf32> to vector<32xf32>
    %c0_57 = arith.constant 0 : index
    %c3 = arith.constant 3 : index
    %c0_58 = arith.constant 0 : index
    %173 = vector.load %arg7[%c0_57, %c3, %c0_58] : memref<1x4x32xf32, #tpu.memory_space<vmem>>, vector<1x1x32xf32>
    %174 = vector.shape_cast %173 : vector<1x1x32xf32> to vector<32xf32>
    %cst_59 = arith.constant dense<0.000000e+00> : vector<2x8xf32>
    %175 = vector.multi_reduction <add>, %170, %cst_59 [2] : vector<2x8x32xf32> to vector<2x8xf32>
    %176 = vector.shape_cast %175 : vector<2x8xf32> to vector<2x8x1xf32>
    %cst_60 = arith.constant 3.200000e+01 : f32
    %177 = vector.broadcast %cst_60 : f32 to vector<2x8x1xf32>
    %178 = arith.divf %176, %177 : vector<2x8x1xf32>
    %179 = vector.broadcast %178 : vector<2x8x1xf32> to vector<2x8x32xf32>
    %180 = arith.subf %170, %179 : vector<2x8x32xf32>
    %181 = arith.mulf %180, %180 : vector<2x8x32xf32>
    %cst_61 = arith.constant dense<0.000000e+00> : vector<2x8xf32>
    %182 = vector.multi_reduction <add>, %181, %cst_61 [2] : vector<2x8x32xf32> to vector<2x8xf32>
    %183 = vector.shape_cast %182 : vector<2x8xf32> to vector<2x8x1xf32>
    %cst_62 = arith.constant 3.200000e+01 : f32
    %184 = vector.broadcast %cst_62 : f32 to vector<2x8x1xf32>
    %185 = arith.divf %183, %184 : vector<2x8x1xf32>
    %cst_63 = arith.constant 9.99999974E-6 : f32
    %186 = vector.broadcast %cst_63 : f32 to vector<2x8x1xf32>
    %187 = arith.addf %185, %186 : vector<2x8x1xf32>
    %188 = math.rsqrt %187 : vector<2x8x1xf32>
    %189 = vector.broadcast %188 : vector<2x8x1xf32> to vector<2x8x32xf32>
    %190 = arith.mulf %180, %189 : vector<2x8x32xf32>
    %191 = vector.shape_cast %172 : vector<32xf32> to vector<1x1x32xf32>
    %192 = vector.broadcast %191 : vector<1x1x32xf32> to vector<2x8x32xf32>
    %193 = arith.mulf %190, %192 : vector<2x8x32xf32>
    %194 = vector.shape_cast %174 : vector<32xf32> to vector<1x1x32xf32>
    %195 = vector.broadcast %194 : vector<1x1x32xf32> to vector<2x8x32xf32>
    %196 = arith.addf %193, %195 : vector<2x8x32xf32>
    %c0_64 = arith.constant 0 : index
    %c0_65 = arith.constant 0 : index
    %c0_66 = arith.constant 0 : index
    %197 = vector.load %arg12[%c0_64, %c0_65, %c0_66] : memref<1x32x128xbf16, #tpu.memory_space<vmem>>, vector<1x32x128xbf16>
    %198 = vector.shape_cast %197 : vector<1x32x128xbf16> to vector<32x128xbf16>
    %199 = vector.shape_cast %196 : vector<2x8x32xf32> to vector<16x32xf32>
    %200 = arith.truncf %199 : vector<16x32xf32> to vector<16x32xbf16>
    %cst_67 = arith.constant dense<0.000000e+00> : vector<16x128xf32>
    %201 = tpu.matmul %200, %198, %cst_67 {dimension_numbers = #tpu.dot_dimension_numbers<[1], [0], [0], [1], [0, 0, 1, 1], [], []>} : vector<16x32xbf16>, vector<32x128xbf16>, vector<16x128xf32> -> vector<16x128xf32>
    %202 = vector.shape_cast %201 : vector<16x128xf32> to vector<2x8x128xf32>
    %c0_68 = arith.constant 0 : index
    %c0_69 = arith.constant 0 : index
    %c0_70 = arith.constant 0 : index
    %203 = vector.load %arg13[%c0_68, %c0_69, %c0_70] : memref<1x1x128xf32, #tpu.memory_space<vmem>>, vector<1x1x128xf32>
    %204 = vector.shape_cast %203 : vector<1x1x128xf32> to vector<1x128xf32>
    %205 = vector.shape_cast %204 : vector<1x128xf32> to vector<1x1x128xf32>
    %206 = vector.broadcast %205 : vector<1x1x128xf32> to vector<2x8x128xf32>
    %207 = arith.addf %202, %206 : vector<2x8x128xf32>
    %cst_71 = arith.constant -1.702000e+00 : f32
    %208 = vector.broadcast %cst_71 : f32 to vector<2x8x128xf32>
    %209 = arith.mulf %208, %207 : vector<2x8x128xf32>
    %210 = math.exp %209 : vector<2x8x128xf32>
    %cst_72 = arith.constant 1.000000e+00 : f32
    %211 = vector.broadcast %cst_72 : f32 to vector<2x8x128xf32>
    %212 = arith.addf %211, %210 : vector<2x8x128xf32>
    %cst_73 = arith.constant 1.000000e+00 : f32
    %213 = vector.broadcast %cst_73 : f32 to vector<2x8x128xf32>
    %214 = arith.divf %213, %212 : vector<2x8x128xf32>
    %215 = arith.mulf %207, %214 : vector<2x8x128xf32>
    %c0_74 = arith.constant 0 : index
    %c0_75 = arith.constant 0 : index
    %c0_76 = arith.constant 0 : index
    %216 = vector.load %arg14[%c0_74, %c0_75, %c0_76] : memref<1x128x32xbf16, #tpu.memory_space<vmem>>, vector<1x128x32xbf16>
    %217 = vector.shape_cast %216 : vector<1x128x32xbf16> to vector<128x32xbf16>
    %218 = vector.shape_cast %215 : vector<2x8x128xf32> to vector<16x128xf32>
    %219 = arith.truncf %218 : vector<16x128xf32> to vector<16x128xbf16>
    %cst_77 = arith.constant dense<0.000000e+00> : vector<16x32xf32>
    %220 = tpu.matmul %219, %217, %cst_77 {dimension_numbers = #tpu.dot_dimension_numbers<[1], [0], [0], [1], [0, 0, 1, 1], [], []>} : vector<16x128xbf16>, vector<128x32xbf16>, vector<16x32xf32> -> vector<16x32xf32>
    %221 = vector.shape_cast %220 : vector<16x32xf32> to vector<2x8x32xf32>
    %222 = arith.addf %170, %221 : vector<2x8x32xf32>
    %c0_78 = arith.constant 0 : index
    %c0_79 = arith.constant 0 : index
    %c0_80 = arith.constant 0 : index
    %223 = vector.load %arg15[%c0_78, %c0_79, %c0_80] : memref<1x1x32xf32, #tpu.memory_space<vmem>>, vector<1x1x32xf32>
    %224 = vector.shape_cast %223 : vector<1x1x32xf32> to vector<1x32xf32>
    %225 = vector.shape_cast %224 : vector<1x32xf32> to vector<1x1x32xf32>
    %226 = vector.broadcast %225 : vector<1x1x32xf32> to vector<2x8x32xf32>
    %227 = arith.addf %222, %226 : vector<2x8x32xf32>
    %c0_81 = arith.constant 0 : index
    %c0_82 = arith.constant 0 : index
    %c0_83 = arith.constant 0 : index
    %228 = vector.load %arg17[%c0_81, %c0_82, %c0_83] : memref<2x8x32xf32, #tpu.memory_space<vmem>>, vector<2x8x32xf32>
    tpu.vector_store %arg17[%c0_81, %c0_82, %c0_83], %227 {strides = array<i32>} : memref<2x8x32xf32, #tpu.memory_space<vmem>>, vector<2x8x32xf32>,
    %c1_i32 = arith.constant 1 : i32
    %229 = arith.cmpi eq, %arg0, %c1_i32 : i32
    %230 = arith.extui %229 : i1 to i32
    %c0_i32_84 = arith.constant 0 : i32
    %231 = arith.cmpi ne, %230, %c0_i32_84 : i32
    scf.if %231 {
      %232 = vector.extract_strided_slice %227 {offsets = [0, 0, 0], sizes = [2, 1, 32], strides = [1, 1, 1]} : vector<2x8x32xf32> to vector<2x1x32xf32>
      %233 = vector.shape_cast %232 : vector<2x1x32xf32> to vector<2x32xf32>
      %c0_85 = arith.constant 0 : index
      %c0_86 = arith.constant 0 : index
      %234 = vector.load %arg5[%c0_85, %c0_86] : memref<2x32xf32, #tpu.memory_space<vmem>>, vector<1x32xf32>
      %235 = vector.shape_cast %234 : vector<1x32xf32> to vector<32xf32>
      %c1_87 = arith.constant 1 : index
      %c0_88 = arith.constant 0 : index
      %236 = vector.load %arg5[%c1_87, %c0_88] : memref<2x32xf32, #tpu.memory_space<vmem>>, vector<1x32xf32>
      %237 = vector.shape_cast %236 : vector<1x32xf32> to vector<32xf32>
      %cst_89 = arith.constant dense<0.000000e+00> : vector<2xf32>
      %238 = vector.multi_reduction <add>, %233, %cst_89 [1] : vector<2x32xf32> to vector<2xf32>
      %239 = vector.shape_cast %238 : vector<2xf32> to vector<2x1xf32>
      %cst_90 = arith.constant 3.200000e+01 : f32
      %240 = vector.broadcast %cst_90 : f32 to vector<2x1xf32>
      %241 = arith.divf %239, %240 : vector<2x1xf32>
      %242 = vector.broadcast %241 : vector<2x1xf32> to vector<2x32xf32>
      %243 = arith.subf %233, %242 : vector<2x32xf32>
      %244 = arith.mulf %243, %243 : vector<2x32xf32>
      %cst_91 = arith.constant dense<0.000000e+00> : vector<2xf32>
      %245 = vector.multi_reduction <add>, %244, %cst_91 [1] : vector<2x32xf32> to vector<2xf32>
      %246 = vector.shape_cast %245 : vector<2xf32> to vector<2x1xf32>
      %cst_92 = arith.constant 3.200000e+01 : f32
      %247 = vector.broadcast %cst_92 : f32 to vector<2x1xf32>
      %248 = arith.divf %246, %247 : vector<2x1xf32>
      %cst_93 = arith.constant 9.99999974E-6 : f32
      %249 = vector.broadcast %cst_93 : f32 to vector<2x1xf32>
      %250 = arith.addf %248, %249 : vector<2x1xf32>
      %251 = math.rsqrt %250 : vector<2x1xf32>
      %252 = vector.broadcast %251 : vector<2x1xf32> to vector<2x32xf32>
      %253 = arith.mulf %243, %252 : vector<2x32xf32>
      %254 = vector.shape_cast %235 : vector<32xf32> to vector<1x32xf32>
      %255 = vector.broadcast %254 : vector<1x32xf32> to vector<2x32xf32>
      %256 = arith.mulf %253, %255 : vector<2x32xf32>
      %257 = vector.shape_cast %237 : vector<32xf32> to vector<1x32xf32>
      %258 = vector.broadcast %257 : vector<1x32xf32> to vector<2x32xf32>
      %259 = arith.addf %256, %258 : vector<2x32xf32>
      %c0_94 = arith.constant 0 : index
      %c0_95 = arith.constant 0 : index
      %260 = vector.load %arg6[%c0_94, %c0_95] : memref<32x16xbf16, #tpu.memory_space<vmem>>, vector<32x16xbf16>
      %261 = arith.truncf %259 : vector<2x32xf32> to vector<2x32xbf16>
      %cst_96 = arith.constant dense<0.000000e+00> : vector<2x16xf32>
      %262 = tpu.matmul %261, %260, %cst_96 {dimension_numbers = #tpu.dot_dimension_numbers<[1], [0], [0], [1], [0, 0, 1, 1], [], []>} : vector<2x32xbf16>, vector<32x16xbf16>, vector<2x16xf32> -> vector<2x16xf32>
      %c0_97 = arith.constant 0 : index
      %c0_98 = arith.constant 0 : index
      %263 = vector.load %arg16[%c0_97, %c0_98] : memref<2x16xf32, #tpu.memory_space<vmem>>, vector<2x16xf32>
      tpu.vector_store %arg16[%c0_97, %c0_98], %262 {strides = array<i32>} : memref<2x16xf32, #tpu.memory_space<vmem>>, vector<2x16xf32>,
    } else {
    }
    return
  }
  func.func @transform_0(%arg0: i32) -> (i32, i32, i32) {
    %c0_i32 = arith.constant 0 : i32
    %c0_i32_0 = arith.constant 0 : i32
    %c0_i32_1 = arith.constant 0 : i32
    %c0_i32_2 = arith.constant 0 : i32
    return %c0_i32, %c0_i32_0, %c0_i32_1 : i32, i32, i32
  }
  func.func @transform_1(%arg0: i32) -> (i32, i32) {
    %c0_i32 = arith.constant 0 : i32
    %c0_i32_0 = arith.constant 0 : i32
    %c0_i32_1 = arith.constant 0 : i32
    return %c0_i32, %c0_i32_0 : i32, i32
  }
  func.func @transform_2(%arg0: i32) -> (i32, i32) {
    %c0_i32 = arith.constant 0 : i32
    %c0_i32_0 = arith.constant 0 : i32
    %c0_i32_1 = arith.constant 0 : i32
    return %c0_i32, %c0_i32_0 : i32, i32
  }
  func.func @transform_3(%arg0: i32) -> (i32, i32) {
    %c0_i32 = arith.constant 0 : i32
    %c0_i32_0 = arith.constant 0 : i32
    %c0_i32_1 = arith.constant 0 : i32
    return %c0_i32, %c0_i32_0 : i32, i32
  }
  func.func @transform_4(%arg0: i32) -> (i32, i32) {
    %c0_i32 = arith.constant 0 : i32
    %c0_i32_0 = arith.constant 0 : i32
    %c0_i32_1 = arith.constant 0 : i32
    return %c0_i32, %c0_i32_0 : i32, i32
  }
  func.func @transform_5(%arg0: i32) -> (i32, i32) {
    %c0_i32 = arith.constant 0 : i32
    %c0_i32_0 = arith.constant 0 : i32
    %c0_i32_1 = arith.constant 0 : i32
    return %c0_i32, %c0_i32_0 : i32, i32
  }
  func.func @transform_6(%arg0: i32) -> (i32, i32, i32) {
    %c0_i32 = arith.constant 0 : i32
    %c0_i32_0 = arith.constant 0 : i32
    %c0_i32_1 = arith.constant 0 : i32
    return %arg0, %c0_i32, %c0_i32_0 : i32, i32, i32
  }
  func.func @transform_7(%arg0: i32) -> (i32, i32, i32) {
    %c0_i32 = arith.constant 0 : i32
    %c0_i32_0 = arith.constant 0 : i32
    %c0_i32_1 = arith.constant 0 : i32
    return %arg0, %c0_i32, %c0_i32_0 : i32, i32, i32
  }
  func.func @transform_8(%arg0: i32) -> (i32, i32, i32) {
    %c0_i32 = arith.constant 0 : i32
    %c0_i32_0 = arith.constant 0 : i32
    %c0_i32_1 = arith.constant 0 : i32
    return %arg0, %c0_i32, %c0_i32_0 : i32, i32, i32
  }
  func.func @transform_9(%arg0: i32) -> (i32, i32, i32) {
    %c0_i32 = arith.constant 0 : i32
    %c0_i32_0 = arith.constant 0 : i32
    %c0_i32_1 = arith.constant 0 : i32
    return %arg0, %c0_i32, %c0_i32_0 : i32, i32, i32
  }
  func.func @transform_10(%arg0: i32) -> (i32, i32, i32) {
    %c0_i32 = arith.constant 0 : i32
    %c0_i32_0 = arith.constant 0 : i32
    %c0_i32_1 = arith.constant 0 : i32
    return %arg0, %c0_i32, %c0_i32_0 : i32, i32, i32
  }
  func.func @transform_11(%arg0: i32) -> (i32, i32, i32) {
    %c0_i32 = arith.constant 0 : i32
    %c0_i32_0 = arith.constant 0 : i32
    %c0_i32_1 = arith.constant 0 : i32
    return %arg0, %c0_i32, %c0_i32_0 : i32, i32, i32
  }
  func.func @transform_12(%arg0: i32) -> (i32, i32, i32) {
    %c0_i32 = arith.constant 0 : i32
    %c0_i32_0 = arith.constant 0 : i32
    %c0_i32_1 = arith.constant 0 : i32
    return %arg0, %c0_i32, %c0_i32_0 : i32, i32, i32
  }
  func.func @transform_13(%arg0: i32) -> (i32, i32, i32) {
    %c0_i32 = arith.constant 0 : i32
    %c0_i32_0 = arith.constant 0 : i32
    %c0_i32_1 = arith.constant 0 : i32
    return %arg0, %c0_i32, %c0_i32_0 : i32, i32, i32
  }
  func.func @transform_14(%arg0: i32) -> (i32, i32, i32) {
    %c0_i32 = arith.constant 0 : i32
    %c0_i32_0 = arith.constant 0 : i32
    %c0_i32_1 = arith.constant 0 : i32
    return %arg0, %c0_i32, %c0_i32_0 : i32, i32, i32
  }
  func.func @transform_15(%arg0: i32) -> (i32, i32) {
    %c0_i32 = arith.constant 0 : i32
    %c0_i32_0 = arith.constant 0 : i32
    %c0_i32_1 = arith.constant 0 : i32
    return %c0_i32, %c0_i32_0 : i32, i32
  }
}

</mosaic_0001>

<bundles_post_ra>
// kernel: clip_visual_forward.1
= control target key start
LH: loop header
LB: loop body
LE: loop exit
PB: predicated region body
PF: predicated region fallthrough
CT: control target
= control target key end

     0   :  { %s3511_s0 = inlined_call_operand.vmem [shape: f32[2,8,192], index: 0, kind: input, shape index: {}]   ;;  %s3512_s1 = inlined_call_operand.vmem [shape: bf16[192,32], index: 1, kind: input, shape index: {}]   ;;  %s3513_s2 = inlined_call_operand.vmem [shape: f32[8,32], index: 2, kind: input, shape index: {}]   ;;  %s3514_s3 = inlined_call_operand.vmem [shape: f32[2,32], index: 3, kind: input, shape index: {}]   ;;  %s3515_s4 = inlined_call_operand.vmem [shape: f32[2,32], index: 4, kind: input, shape index: {}]   ;;  %s3516_s5 = inlined_call_operand.vmem [shape: bf16[32,16], index: 5, kind: input, shape index: {}]   ;;  %s3517_s6 = inlined_call_operand.vmem [shape: f32[2,4,32], index: 6, kind: input, shape index: {}]   ;;  %s3518_s7 = inlined_call_operand.vmem [shape: bf16[2,32,96], index: 7, kind: input, shape index: {}]   ;;  %s3519_s8 = inlined_call_operand.vmem [shape: f32[2,1,96], index: 8, kind: input, shape index: {}]   ;;  %s3520_s9 = inlined_call_operand.vmem [shape: bf16[2,32,32], index: 9, kind: input, shape index: {}]   ;;  %s3521_s10 = inlined_call_operand.vmem [shape: f32[2,1,32], index: 10, kind: input, shape index: {}]   ;;  %s3522_s11 = inlined_call_operand.vmem [shape: bf16[2,32,128], index: 11, kind: input, shape index: {}]   ;;  %s3523_s12 = inlined_call_operand.vmem [shape: f32[2,1,128], index: 12, kind: input, shape index: {}]   ;;  %s3524_s13 = inlined_call_operand.vmem [shape: bf16[2,128,32], index: 13, kind: input, shape index: {}]   ;;  %s3525_s14 = inlined_call_operand.vmem [shape: f32[2,1,32], index: 14, kind: input, shape index: {}]   ;;  %s3526_s15 = inlined_call_operand.hbm [shape: f32[2,16], index: 15, kind: output, shape index: {}]  }
   0x1   :  { %3531 = sst [smem:[#allocation7_spill]] %s3515_s4 }
   0x2   :  { %3532 = sst [smem:[#allocation8_spill]] %s3516_s5 }
   0x3   :  { %3533 = sst [smem:[#allocation9_spill]] %s3517_s6 }
   0x4   :  { %3534 = sst [smem:[#allocation10_spill]] %s3518_s7 }
   0x5   :  { %3535 = sst [smem:[#allocation11_spill]] %s3520_s9 }
   0x6   :  { %3536 = sst [smem:[#allocation12_spill]] %s3526_s15 }
   0x7   :  { %20 = vsyncpa [#allocation4], 0  ;;  %s3086_s18 = smov 0  }
   0x8 LB: > { %3537 = sst [smem:[#allocation6_spill]] %s2986_s18  ;;  %s3092_s19 = sadd.s32 4294967295, %s2986_s18   ;;  %s2986_s18 = sphi %s3086_s18, %s26_s18  }
   0x9   : > { %p2534_p0 = scmp.ge.s32.totalorder %s2986_s18, 1  ;;  %p504_p1 = scmp.lt.s32.totalorder %s2986_s18, 3 }
   0xb   : > { %p505_p2 = pnand %p2534_p0, %p504_p1 }
   0xc   : > { %p578_p3 = scmp.lt.s32.totalorder (!%p505_p2), %s3092_s19, 1  ;;  %s3538_s6 = sld [smem:[#allocation9_spill]] (!%p505_p2) }
   0xd   : > { %508 = sbr.rel (%p505_p2) target bundleno = 5850 (0x16da), region = 80  ;;  %s3539_s7 = sld [smem:[#allocation10_spill]] (!%p505_p2) }
   0xe   : > { %s3540_s9 = sld [smem:[#allocation11_spill]] (!%p505_p2)  ;;  %p2544_p4 = scmp.ne.s32.totalorder (!%p505_p2), %s3092_s19, 0 }
  0x14   : > { %s3098_s20 = scalar_select %p578_p3, %s3092_s19, 1 }
  0x15   : > { %618 = sbr.rel (%p2544_p4) target bundleno = 602 (0x25a), region = 84  ;;  %v2870_v0 = vld [vmem:[%s3512_s1] sm:$0xff] (!%p2544_p4)   ;;  %v2988_v1 = vmov (!%p2544_p4), 0   ;;  %v2871_v2 = vld [vmem:[%s3512_s1 + $0x8] sm:$0xff] (!%p2544_p4)   ;;  %v2872_v3 = vld [vmem:[%s3512_s1 + $0x10] sm:$0xff] (!%p2544_p4)   ;;  %vm721_vm0 = vcmask (!%p2544_p4), 523264  }
  0x16   : > { %s2535_s21 = sshll.u32 %s3098_s20, 2  ;;  %s2612_s22 = sshll.u32 %s3098_s20, 4  ;;  %725 = vmatprep.subr.bf16.mxu0 (!%p2544_p4), %v2988_v1  ;;  %v2873_v4 = vld [vmem:[%s3512_s1 + $0x18] sm:$0xff] (!%p2544_p4)   ;;  %v620_v5 = vld [vmem:[%s3511_s0 + $0x8] sm:$0xff] (!%p2544_p4)  ;;  %v2874_v8 = vld [vmem:[%s3512_s1 + $0x20] sm:$0xff] (!%p2544_p4)   ;;  %vm771_vm1 = vcmask (!%p2544_p4), 261120  }
  0x17   : > { %s3105_s25 = scalar_lea.vmem %s3538_s6, %s2535_s21  ;;  %s3110_s28 = scalar_lea.vmem %s3539_s7, %s2612_s22  ;;  %726 = vmatpush1.bf16.msra.mxu0 (!%p2544_p4), %v2870_v0  ;;  %v622_v6 = vld [vmem:[%s3511_s0 + $0x18] sm:$0xff] (!%p2544_p4)  ;;  %v2875_v9 = vld [vmem:[%s3512_s1 + $0x28] sm:$0xff] (!%p2544_p4)   ;;  %v2876_v10 = vld [vmem:[%s3512_s1 + $0x30] sm:$0xff] (!%p2544_p4)  }
  0x18   : > { %s3119_s15 = scalar_lea.vmem %s3540_s9, %s2612_s22  ;;  %s597_s23 = scalar_lea.vmem %s3521_s10, %s3098_s20  ;;  %727 = vmatprep.subr.bf16.mxu0 (!%p2544_p4), %v2988_v1  ;;  %v648_v7 = vpack.c.bf16 (!%p2544_p4), %v622_v6, %v620_v5  ;;  %v2877_v11 = vld [vmem:[%s3512_s1 + $0x38] sm:$0xff] (!%p2544_p4)   ;;  %v2878_v12 = vld [vmem:[%s3512_s1 + $0x40] sm:$0xff] (!%p2544_p4)   ;;  %v2879_v13 = vld [vmem:[%s3512_s1 + $0x48] sm:$0xff] (!%p2544_p4)  }
  0x19   : > { %s3128_s6 = scalar_lea.vmem %s3522_s11, %s2612_s22  ;;  %s605_s7 = scalar_lea.vmem %s3523_s12, %s3098_s20  ;;  %v2880_v14 = vld [vmem:[%s3512_s1 + $0x50] sm:$0xff] (!%p2544_p4)   ;;  %v2881_v15 = vld [vmem:[%s3512_s1 + $0x58] sm:$0xff] (!%p2544_p4)   ;;  %v619_v16 = vld [vmem:[%s3511_s0] sm:$0xff] (!%p2544_p4) }
  0x1a   : > { %s2615_s29 = sshll.u32 %s3098_s20, 6  ;;  %s613_s4 = scalar_lea.vmem %s3525_s14, %s3098_s20  ;;  %2557 = vmatprep.mubr.msk.bf16.mxu0 (!%p2544_p4), %vm721_vm0, %v648_v7  ;;  %v621_v17 = vld [vmem:[%s3511_s0 + $0x10] sm:$0xff] (!%p2544_p4)  ;;  %v766_v19 = vld [vmem:[%s3513_s2] sm:$0xff] (!%p2544_p4) }
  0x1b   : > { %s3138_s18 = scalar_lea.vmem %s3524_s13, %s2615_s29  ;;  %728 = vmatpush1.bf16.msra.mxu0 (!%p2544_p4), %v2871_v2  ;;  %v647_v18 = vpack.c.bf16 (!%p2544_p4), %v621_v17, %v619_v16  ;;  %v2558_v45 = vld [vmem:[%s3514_s3] ss:$0 sm:$0xff] (!%p2544_p4)  ;;  %v2559_v47 = vld [vmem:[%s3514_s3 + $0x1] ss:$0 sm:$0xff] (!%p2544_p4) }
  0x1c   : > { %729 = vmatprep.subr.bf16.mxu0 %v2988_v1 }
  0x1f   : > { %730 = vmatpush1.bf16.msra.mxu0 %v2872_v3 }
  0x20   : > { %731 = vmatprep.subr.bf16.mxu0 %v2988_v1 }
  0x23   : > { %732 = vmatpush1.bf16.msra.mxu0 %v2873_v4 }
  0x24   : > { %733 = vmatprep.subr.bf16.mxu0 %v2988_v1 }
  0x27   : > { %734 = vmatpush1.bf16.msra.mxu0 %v2874_v8 }
  0x28   : > { %735 = vmatprep.subr.bf16.mxu0 %v2988_v1 }
  0x2b   : > { %736 = vmatpush1.bf16.msra.mxu0 %v2875_v9 }
  0x2c   : > { %737 = vmatprep.subr.bf16.mxu0 %v2988_v1 }
  0x2f   : > { %738 = vmatpush1.bf16.msra.mxu0 %v2876_v10 }
  0x30   : > { %739 = vmatprep.subr.bf16.mxu0 %v2988_v1 }
  0x33   : > { %740 = vmatpush1.bf16.msra.mxu0 %v2877_v11 }
  0x34   : > { %741 = vmatprep.subr.bf16.mxu0 %v2988_v1 }
  0x37   : > { %742 = vmatpush1.bf16.msra.mxu0 %v2878_v12 }
  0x38   : > { %743 = vmatprep.subr.bf16.mxu0 %v2988_v1 }
  0x3b   : > { %744 = vmatpush1.bf16.msra.mxu0 %v2879_v13 }
  0x3c   : > { %745 = vmatprep.subr.bf16.mxu0 %v2988_v1 }
  0x3f   : > { %746 = vmatpush1.bf16.msra.mxu0 %v2880_v14 }
  0x40   : > { %747 = vmatprep.subr.bf16.mxu0 %v2988_v1 }
  0x43   : > { %748 = vmatpush1.bf16.msra.mxu0 %v2881_v15 }
  0x46   : > { %758 = vmatmul.mubr.bf16.vlgmr.msra.gmra.mrb[0].mxu0 %v647_v18 }
 0x119   : > { %v759_v20 = vpop.f32.mrb[0].mxu0 }
 0x11a   : > { %v767_v21 = vadd.f32 %v766_v19, %v759_v20  ;;  %v761_v22 = vpop.f32.mrb[1].mxu0 }
 0x11b   : > { %v762_v23 = vpop.f32.mrb[2].mxu0 }
 0x11c   : > { %v768_v24 = vadd.f32 %v766_v19, %v762_v23  ;;  %v764_v25 = vpop.f32.mrb[3].mxu0  ;;  %v772_v26 = vsel %vm771_vm1, %v767_v21, 0.0 }
 0x11d   : > { %773 = vadd.xlane.f32.xlu0 %v772_v26 }
 0x11e   : > { %v775_v27 = vsel %vm771_vm1, %v768_v24, 0.0 }
 0x121   : > { %776 = vadd.xlane.f32.xlu0 %v775_v27 }
 0x1aa   : > { %v774_v28 = vpop.xlane.xlu0 %773 }
 0x1ab   : > { %v779_v29 = vmul.f32 0.03125, %v774_v28 }
 0x1ad   : > { %v781_v30 = vsub.f32 %v767_v21, %v779_v29 }
 0x1ae   : > { %v777_v31 = vpop.xlane.xlu0 %776 }
 0x1af   : > { %v780_v32 = vmul.f32 0.03125, %v777_v31  ;;  %v783_v33 = vmul.f32 %v781_v30, %v781_v30 }
 0x1b1   : > { %v782_v34 = vsub.f32 %v768_v24, %v780_v32  ;;  %v785_v35 = vsel %vm771_vm1, %v783_v33, 0.0 }
 0x1b2   : > { %786 = vadd.xlane.f32.xlu1 %v785_v35 }
 0x1b3   : > { %v784_v36 = vmul.f32 %v782_v34, %v782_v34 }
 0x1b5   : > { %v788_v37 = vsel %vm771_vm1, %v784_v36, 0.0 }
 0x1b6   : > { %789 = vadd.xlane.f32.xlu1 %v788_v37 }
 0x23f   : > { %v787_v38 = vpop.xlane.xlu1 %786 }
 0x240   : > { %v791_v39 = vmul.f32 0.03125, %v787_v38 }
 0x242   : > { %v793_v40 = vadd.f32 1e-05, %v791_v39 }
 0x243   : > { %v790_v41 = vpop.xlane.xlu1 %789 }
 0x244   : > { %2882 = vrsqrt.f32 %v793_v40  ;;  %v792_v42 = vmul.f32 0.03125, %v790_v41 }
 0x246   : > { %v794_v43 = vadd.f32 1e-05, %v792_v42 }
 0x248   : > { %2884 = vrsqrt.f32 %v794_v43 }
 0x24e   : > { %v2883_v44 = vpop.eup %2882 }
 0x24f   : > { %v797_v46 = vmul.f32 %v2883_v44, %v781_v30 }
 0x251   : > { %v803_v48 = vmul.f32 %v2558_v45, %v797_v46 }
 0x252   : > { %v2885_v49 = vpop.eup %2884 }
 0x253   : > { %v809_v50 = vadd.f32 %v2559_v47, %v803_v48  ;;  %v798_v51 = vmul.f32 %v2885_v49, %v782_v34 }
 0x255   : > { %811 = vst.msk [vmem:[#allocation2] sm:$0xff] %vm771_vm1, %v809_v50  ;;  %v804_v52 = vmul.f32 %v2558_v45, %v798_v51 }
 0x257   : > { %v810_v53 = vadd.f32 %v2559_v47, %v804_v52 }
 0x259   : > { %812 = vst.msk [vmem:[#allocation2 + $0x8] sm:$0xff] %vm771_vm1, %v810_v53 }
 0x25a PF: > { %vm817_vm2 = vcmask 261120   ;;  %v2886_v4 = vld [vmem:[%s3110_s28] sm:$0xff]   ;;  %v2989_v5 = vmov 0.0   ;;  %v2887_v6 = vld [vmem:[%s3110_s28 + $0x8] sm:$0xff]   ;;  %vm2990_vm3 = vmmov 0   ;;  %s3541_s9 = scalar_lea.vmem %s3519_s8, %s3098_s20  ;;  %s2991_s27 = smov 96   ;;  %v929_v41 = vlaneseq }
 0x25b   : > { %2674 = vmatprep.subr.bf16.mxu1 %v2989_v5  ;;  %2700 = vmatprep.subr.bf16.mxu0 %v2989_v5  ;;  %v2560_v15 = vld [vmem:[%s3105_s25] ss:$0 sm:$0xff]  ;;  %v2561_v19 = vld [vmem:[%s3105_s25 + $0x1] ss:$0 sm:$0xff]  ;;  %vm940_vm4 = vcmask 64512   ;;  %s2993_s29 = smov 64  }
 0x25c   : > { %v3208_v54 = vld [vmem:[#allocation2] sm:$0xff]  ;;  %2675 = vmatpush3.bf16.msra.mxu1 %v2886_v4  ;;  %2678 = vmatprep.mubr.msk.bf16.mxu1 %vm2990_vm3, %v2989_v5  ;;  %v930_v42 = vand.u32 127, %v929_v41  ;;  %v2992_v43 = vmov -1e+30   ;;  %s2994_s30 = smov 120   ;;  %s2995_s17 = smov 88  }
 0x25d   : > { %v818_v56 = vsel %vm817_vm2, %v3208_v54, 0.0  ;;  %2676 = vmatprep.subr.bf16.mxu1 %v2989_v5  ;;  %2702 = vmatprep.mubr.msk.bf16.mxu0 %vm2990_vm3, %v2989_v5  ;;  %v2565_v24 = vld [vmem:[%s3541_s9] ss:$0 sm:$0xff]  ;;  %vm1065_vm6 = vcmask 1043456   ;;  %s2996_s5 = smov 56   ;;  %s2997_s22 = smov 80  }
 0x25e   : > { %819 = vadd.xlane.f32.xlu0 %v818_v56  ;;  %vm931_vm5 = vcmp.lt.s32.totalorder %v930_v42, 5  ;;  %s2998_s21 = smov 112   ;;  %s2999_s24 = smov 48  }
 0x25f   : > { %v3262_v44 = vsel %vm931_vm5, 0.0, %v2992_v43  ;;  %s3000_s16 = smov 72   ;;  %s3001_s28 = smov 104  }
 0x260   : > { %v3210_v55 = vld [vmem:[#allocation2 + $0x8] sm:$0xff]  ;;  %2677 = vmatpush3.bf16.msra.mxu1 %v2887_v6  ;;  %s3002_s26 = smov 40   ;;  %p2602_p5 = scmp.ne.s32.totalorder %s3092_s19, 1 }
 0x261   : > { %v821_v57 = vsel %vm817_vm2, %v3210_v55, 0.0  ;;  %2682 = vmatprep.subr.bf16.mxu1 %v2989_v5  ;;  %vm2286_vm7 = vcmask (!%p2602_p5), 1041409   ;;  %vm2289_vm8 = vcmask (!%p2602_p5), 254976   ;;  %vm3004_vm9 = vmmov (!%p2602_p5), 0  }
 0x262   : > { %822 = vadd.xlane.f32.xlu0 %v821_v57  ;;  %vm2399_vm10 = vcmask (!%p2602_p5), 123904  }
 0x2eb   : > { %v820_v58 = vpop.xlane.xlu0 %819 }
 0x2ec   : > { %v825_v59 = vmul.f32 0.03125, %v820_v58 }
 0x2ee   : > { %v827_v60 = vsub.f32 %v3208_v54, %v825_v59 }
 0x2ef   : > { %v823_v61 = vpop.xlane.xlu0 %822 }
 0x2f0   : > { %v826_v62 = vmul.f32 0.03125, %v823_v61  ;;  %v829_v63 = vmul.f32 %v827_v60, %v827_v60 }
 0x2f2   : > { %v828_v0 = vsub.f32 %v3210_v55, %v826_v62  ;;  %v831_v1 = vsel %vm817_vm2, %v829_v63, 0.0 }
 0x2f3   : > { %832 = vadd.xlane.f32.xlu1 %v831_v1 }
 0x2f4   : > { %v830_v2 = vmul.f32 %v828_v0, %v828_v0 }
 0x2f6   : > { %v834_v3 = vsel %vm817_vm2, %v830_v2, 0.0 }
 0x2f7   : > { %835 = vadd.xlane.f32.xlu1 %v834_v3 }
 0x380   : > { %v833_v7 = vpop.xlane.xlu1 %832 }
 0x381   : > { %v837_v8 = vmul.f32 0.03125, %v833_v7 }
 0x383   : > { %v839_v9 = vadd.f32 1e-05, %v837_v8 }
 0x384   : > { %v836_v10 = vpop.xlane.xlu1 %835 }
 0x385   : > { %2898 = vrsqrt.f32 %v839_v9  ;;  %v838_v11 = vmul.f32 0.03125, %v836_v10 }
 0x387   : > { %v840_v12 = vadd.f32 1e-05, %v838_v11 }
 0x389   : > { %2900 = vrsqrt.f32 %v840_v12 }
 0x38f   : > { %v2899_v13 = vpop.eup %2898 }
 0x390   : > { %v843_v14 = vmul.f32 %v2899_v13, %v827_v60 }
 0x392   : > { %v849_v18 = vmul.f32 %v2560_v15, %v843_v14 }
 0x393   : > { %v2901_v16 = vpop.eup %2900 }
 0x394   : > { %v844_v17 = vmul.f32 %v2901_v16, %v828_v0  ;;  %v855_v21 = vadd.f32 %v2561_v19, %v849_v18 }
 0x396   : > { %v850_v20 = vmul.f32 %v2560_v15, %v844_v17 }
 0x398   : > { %v856_v22 = vadd.f32 %v2561_v19, %v850_v20 }
 0x39a   : > { %v861_v23 = vpack.c.bf16 %v856_v22, %v855_v21  ;;  %v1157_v21 = vld [vmem:[%s3119_s15] sm:$0xf] }
 0x39b   : > { %v1163_v22 = vsel %vm1065_vm6, %v1157_v21, 0 }
 0x39c   : > { %2679 = vmatmul.mubr.msk.bf16.vlgmr.msra.gmra.mrb[0].mxu1 %vm817_vm2, %v861_v23 }
 0x39d   : > { %2684 = vmatprep.mubr.msk.bf16.mxu1 %vm2990_vm3, %v2989_v5 }
 0x46f   : > { %v911_v25 = vpop.f32.mrb[0].mxu1 }
 0x470   : > { %v925_v26 = vadd.f32 %v2565_v24, %v911_v25  ;;  %v2680_v27 = vpop.f32.mrb[1].mxu1 }
 0x471   : > { %v914_v28 = vpop.f32.mrb[2].mxu1 }
 0x472   : > { %v3240_v29 = vpack.c.bf16 %v925_v26, %v925_v26  ;;  %v926_v30 = vadd.f32 %v2565_v24, %v914_v28  ;;  %v2681_v31 = vpop.f32.mrb[3].mxu1  ;;  %v927_v35 = vmul.f32 0.35355338, %v925_v26 }
 0x474   : > { %v3242_v32 = vpack.c.bf16 %v926_v30, %v926_v30  ;;  %938 = vrot.lane.b32.xlu0 %v3240_v29, %s2991_s27  ;;  %v3248_v37 = vpack.c.bf16 %v927_v35, %v927_v35  ;;  %v928_v39 = vmul.f32 0.35355338, %v926_v30 }
 0x476   : > { %988 = vrot.lane.b32.xlu1 %v3242_v32, %s2991_s27  ;;  %v3256_v40 = vpack.c.bf16 %v928_v39, %v928_v39 }
 0x4e6   : > { %v939_v33 = vpop.permute.xlu0 %938 }
 0x4e7   : > { %v945_v34 = vsel %vm940_vm4, %v939_v33, 0 }
 0x4e8   : > { %2683 = vmatpush3.bf16.xpose.msra.mxu1 %v945_v34  ;;  %v989_v36 = vpop.permute.xlu1 %988 }
 0x4e9   : > { %2688 = vmatprep.subr.bf16.mxu1 %v2989_v5  ;;  %v994_v38 = vsel %vm940_vm4, %v989_v36, 0 }
 0x4ef   : > { %2685 = vmatmul.mubr.msk.bf16.vlgmr.msra.gmra.mrb[4].mxu1 %vm940_vm4, %v3248_v37 }
 0x4f0   : > { %2689 = vmatpush3.bf16.xpose.msra.mxu1 %v994_v38  ;;  %2690 = vmatprep.mubr.msk.bf16.mxu1 %vm2990_vm3, %v2989_v5 }
 0x4f1   : > { %2694 = vmatprep.subr.bf16.mxu1 %v2989_v5 }
 0x4f7   : > { %2691 = vmatmul.mubr.msk.bf16.vlgmr.msra.gmra.mrb[8].mxu1 %vm940_vm4, %v3256_v40 }
 0x4f8   : > { %2696 = vmatprep.mubr.msk.bf16.mxu1 %vm2990_vm3, %v2989_v5 }
 0x5c2   : > { %v981_v45 = vpop.f32.mrb[4].mxu1 }
 0x5c3   : > { %v982_v46 = vadd.f32 %v981_v45, %v3262_v44  ;;  %v2686_v47 = vpop.f32.mrb[5].mxu1 }
 0x5c4   : > { %v984_v48 = vpop.f32.mrb[6].mxu1 }
 0x5c5   : > { %v2687_v49 = vpop.f32.mrb[7].mxu1  ;;  %v1036_v50 = vsel %vm940_vm4, %v982_v46, -inf }
 0x5c6   : > { %1037 = vmax.xlane.f32.xlu1 %v1036_v50 }
 0x5ca   : > { %v1030_v51 = vpop.f32.mrb[8].mxu1 }
 0x5cb   : > { %v1031_v52 = vadd.f32 %v1030_v51, %v3262_v44  ;;  %v2692_v53 = vpop.f32.mrb[9].mxu1 }
 0x5cc   : > { %v1033_v56 = vpop.f32.mrb[10].mxu1 }
 0x5cd   : > { %v2693_v57 = vpop.f32.mrb[11].mxu1  ;;  %v1039_v58 = vsel %vm940_vm4, %v1031_v52, -inf }
 0x5ce   : > { %1040 = vmax.xlane.f32.xlu0 %v1039_v58 }
 0x653   : > { %v1038_v59 = vpop.xlane.xlu1 %1037 }
 0x654   : > { %v1042_v60 = vsub.f32 %v982_v46, %v1038_v59 }
 0x656   : > { %v1044_v61 = vmul.f32 1.442695, %v1042_v60 }
 0x658   : > { %2902 = vpow2.f32 %v1044_v61 }
 0x65b   : > { %v1041_v62 = vpop.xlane.xlu0 %1040 }
 0x65c   : > { %v1043_v63 = vsub.f32 %v1031_v52, %v1041_v62 }
 0x65e   : > { %v1046_v0 = vmul.f32 1.442695, %v1043_v63 }
 0x660   : > { %2904 = vpow2.f32 %v1046_v0 }
 0x662   : > { %v2903_v1 = vpop.eup %2902 }
 0x663   : > { %v1048_v2 = vsel %vm940_vm4, %v2903_v1, 0.0 }
 0x664   : > { %1049 = vadd.xlane.f32.xlu0 %v1048_v2 }
 0x66a   : > { %v2905_v3 = vpop.eup %2904 }
 0x66b   : > { %v1051_v4 = vsel %vm940_vm4, %v2905_v3, 0.0 }
 0x66c   : > { %1052 = vadd.xlane.f32.xlu1 %v1051_v4 }
 0x67a   : > { %1060 = vrot.lane.b32.xlu0 %v3240_v29, %s2993_s29 }
 0x67d   : > { %1109 = vrot.lane.b32.xlu1 %v3242_v32, %s2993_s29 }
 0x67e   : > { %1209 = vrot.lane.b32.xlu0 %v3248_v37, %s2994_s30 }
 0x681   : > { %1211 = vrot.lane.b32.xlu1 %v3240_v29, %s2995_s17 }
 0x685   : > { %1262 = vrot.lane.b32.xlu1 %v3242_v32, %s2995_s17 }
 0x689   : > { %1260 = vrot.lane.b32.xlu1 %v3256_v40, %s2994_s30 }
 0x6f1   : > { %v1050_v6 = vpop.xlane.xlu0 %1049 }
 0x6f2   : > { %2906 = vrcp.f32 %v1050_v6 }
 0x6f5   : > { %v1061_v7 = vpop.permute.xlu0 %1060 }
 0x6f6   : > { %v1067_v8 = vsel %vm1065_vm6, %v1061_v7, 0 }
 0x6f7   : > { %2695 = vmatpush3.bf16.msra.mxu1 %v1067_v8 }
 0x6f8   : > { %2706 = vmatprep.subr.bf16.mxu1 %v2989_v5 }
 0x6f9   : > { %v1053_v9 = vpop.xlane.xlu1 %1052  ;;  %v1210_v20 = vpop.permute.xlu0 %1209 }
 0x6fa   : > { %2908 = vrcp.f32 %v1053_v9 }
 0x6fc   : > { %v2907_v10 = vpop.eup %2906 }
 0x6fd   : > { %v1056_v11 = vmul.f32 %v2907_v10, %v2903_v1  ;;  %v1110_v12 = vpop.permute.xlu1 %1109 }
 0x6fe   : > { %v1115_v13 = vsel %vm1065_vm6, %v1110_v12, 0 }
 0x6ff   : > { %2701 = vmatpush3.bf16.msra.mxu0 %v1115_v13  ;;  %v1058_v14 = vpack.c.bf16 %v1056_v11, %v1056_v11 }
 0x700   : > { %2712 = vmatprep.subr.bf16.mxu0 %v2989_v5 }
 0x701   : > { %2697 = vmatmul.mubr.msk.bf16.vlgmr.msra.gmra.mrb[12].mxu1 %vm940_vm4, %v1058_v14  ;;  %v1212_v17 = vpop.permute.xlu1 %1211 }
 0x702   : > { %2708 = vmatprep.mubr.msk.bf16.mxu1 %vm2990_vm3, %v2989_v5  ;;  %v1217_v19 = vsel %vm940_vm4, %v1212_v17, 0  ;;  %2707 = vmatpush3.bf16.msra.mxu1 %v1163_v22 }
 0x703   : > { %2718 = vmatprep.subr.bf16.mxu1 %v2989_v5 }
 0x704   : > { %v2909_v15 = vpop.eup %2908 }
 0x705   : > { %v1057_v16 = vmul.f32 %v2909_v15, %v2905_v3  ;;  %v1263_v27 = vpop.permute.xlu1 %1262 }
 0x706   : > { %v1268_v34 = vsel %vm940_vm4, %v1263_v27, 0 }
 0x707   : > { %v1059_v18 = vpack.c.bf16 %v1057_v16, %v1057_v16 }
 0x709   : > { %2703 = vmatmul.mubr.msk.bf16.vlgmr.msra.gmra.mrb[0].mxu0 %vm940_vm4, %v1059_v18  ;;  %v1261_v41 = vpop.permute.xlu1 %1260 }
 0x70a   : > { %2713 = vmatpush3.bf16.xpose.msra.mxu0 %v1217_v19  ;;  %2714 = vmatprep.mubr.msk.bf16.mxu0 %vm2990_vm3, %v2989_v5 }
 0x70b   : > { %2724 = vmatprep.subr.bf16.mxu0 %v2989_v5 }
 0x711   : > { %2715 = vmatmul.mubr.msk.bf16.vlgmr.msra.gmra.mrb[4].mxu0 %vm940_vm4, %v1210_v20  ;;  %v1430_v20 = vld [vmem:[%s3119_s15 + $0x4] sm:$0xf] }
 0x712   : > { %2726 = vmatprep.mubr.msk.bf16.mxu0 %vm2990_vm3, %v2989_v5  ;;  %v1436_v21 = vsel %vm1065_vm6, %v1430_v20, 0 }
 0x7d4   : > { %v1103_v23 = vpop.f32.mrb[12].mxu1 }
 0x7d5   : > { %v2698_v24 = vpop.f32.mrb[13].mxu1 }
 0x7d6   : > { %v1106_v25 = vpop.f32.mrb[14].mxu1 }
 0x7d7   : > { %v2699_v26 = vpop.f32.mrb[15].mxu1 }
 0x7dc   : > { %v1151_v28 = vpop.f32.mrb[0].mxu0 }
 0x7dd   : > { %v1158_v30 = vpack.c.bf16 %v1151_v28, %v1103_v23  ;;  %v2704_v31 = vpop.f32.mrb[1].mxu0 }
 0x7de   : > { %v1154_v33 = vpop.f32.mrb[2].mxu0 }
 0x7df   : > { %v2705_v35 = vpop.f32.mrb[3].mxu0  ;;  %2709 = vmatmul.mubr.msk.bf16.vlgmr.msra.gmra.mrb[16].mxu1 %vm940_vm4, %v1158_v30 }
 0x7e0   : > { %2719 = vmatpush3.bf16.xpose.msra.mxu1 %v1268_v34  ;;  %2720 = vmatprep.mubr.msk.bf16.mxu1 %vm2990_vm3, %v2989_v5 }
 0x7e1   : > { %2730 = vmatprep.subr.bf16.mxu1 %v2989_v5 }
 0x7e4   : > { %v1253_v36 = vpop.f32.mrb[4].mxu0 }
 0x7e5   : > { %v1254_v38 = vadd.f32 %v1253_v36, %v3262_v44  ;;  %v2716_v39 = vpop.f32.mrb[5].mxu0 }
 0x7e6   : > { %v1256_v42 = vpop.f32.mrb[6].mxu0 }
 0x7e7   : > { %v2717_v43 = vpop.f32.mrb[7].mxu0  ;;  %2721 = vmatmul.mubr.msk.bf16.vlgmr.msra.gmra.mrb[20].mxu1 %vm940_vm4, %v1261_v41  ;;  %v1310_v45 = vsel %vm940_vm4, %v1254_v38, -inf }
 0x7e8   : > { %1311 = vmax.xlane.f32.xlu0 %v1310_v45  ;;  %2732 = vmatprep.mubr.msk.bf16.mxu1 %vm2990_vm3, %v2989_v5 }
 0x875   : > { %v1312_v46 = vpop.xlane.xlu0 %1311 }
 0x876   : > { %v1316_v47 = vsub.f32 %v1254_v38, %v1312_v46 }
 0x878   : > { %v1318_v48 = vmul.f32 1.442695, %v1316_v47 }
 0x87a   : > { %2910 = vpow2.f32 %v1318_v48 }
 0x884   : > { %v2911_v49 = vpop.eup %2910 }
 0x885   : > { %v1322_v50 = vsel %vm940_vm4, %v2911_v49, 0.0 }
 0x886   : > { %1323 = vadd.xlane.f32.xlu0 %v1322_v50 }
 0x8b2   : > { %v3305_v51 = vpop.f32.mrb[16].mxu1 }
 0x8b3   : > { %v2710_v52 = vpop.f32.mrb[17].mxu1 }
 0x8b4   : > { %v3307_v53 = vpop.f32.mrb[18].mxu1 }
 0x8b5   : > { %v2711_v56 = vpop.f32.mrb[19].mxu1 }
 0x8ba   : > { %v1304_v57 = vpop.f32.mrb[20].mxu1 }
 0x8bb   : > { %v1305_v58 = vadd.f32 %v1304_v57, %v3262_v44  ;;  %v2722_v59 = vpop.f32.mrb[21].mxu1 }
 0x8bc   : > { %v1307_v60 = vpop.f32.mrb[22].mxu1 }
 0x8bd   : > { %v2723_v61 = vpop.f32.mrb[23].mxu1  ;;  %v1313_v62 = vsel %vm940_vm4, %v1305_v58, -inf }
 0x8be   : > { %1314 = vmax.xlane.f32.xlu1 %v1313_v62 }
 0x8cf   : > { %1382 = vrot.lane.b32.xlu1 %v3242_v32, %s2996_s5 }
 0x8d3   : > { %1483 = vrot.lane.b32.xlu1 %v3240_v29, %s2997_s22 }
 0x8d7   : > { %1533 = vrot.lane.b32.xlu1 %v3242_v32, %s2997_s22 }
 0x8db   : > { %1531 = vrot.lane.b32.xlu1 %v3256_v40, %s2998_s21 }
 0x913   : > { %v1324_v7 = vpop.xlane.xlu0 %1323 }
 0x94b   : > { %v1315_v63 = vpop.xlane.xlu1 %1314 }
 0x94c   : > { %v1317_v0 = vsub.f32 %v1305_v58, %v1315_v63 }
 0x94e   : > { %v1320_v1 = vmul.f32 1.442695, %v1317_v0 }
 0x94f   : > { %v1383_v2 = vpop.permute.xlu1 %1382 }
 0x950   : > { %2912 = vpow2.f32 %v1320_v1  ;;  %v1388_v3 = vsel %vm1065_vm6, %v1383_v2, 0 }
 0x951   : > { %2731 = vmatpush3.bf16.msra.mxu1 %v1388_v3  ;;  %2914 = vrcp.f32 %v1324_v7 }
 0x952   : > { %2742 = vmatprep.subr.bf16.mxu1 %v2989_v5 }
 0x953   : > { %v1484_v16 = vpop.permute.xlu1 %1483 }
 0x954   : > { %v1489_v18 = vsel %vm940_vm4, %v1484_v16, 0 }
 0x957   : > { %v1534_v26 = vpop.permute.xlu1 %1533 }
 0x958   : > { %v1539_v33 = vsel %vm940_vm4, %v1534_v26, 0 }
 0x95a   : > { %v2913_v4 = vpop.eup %2912 }
 0x95b   : > { %v1325_v6 = vsel %vm940_vm4, %v2913_v4, 0.0  ;;  %v2915_v8 = vpop.eup %2914  ;;  %v1532_v39 = vpop.permute.xlu1 %1531 }
 0x95c   : > { %1326 = vadd.xlane.f32.xlu0 %v1325_v6  ;;  %v1330_v10 = vmul.f32 %v2915_v8, %v2911_v49 }
 0x95e   : > { %v1332_v13 = vpack.c.bf16 %v1330_v10, %v1330_v10 }
 0x972   : > { %1334 = vrot.lane.b32.xlu0 %v3240_v29, %s2996_s5  ;;  %s3543_s5 = sld [smem:[#allocation7_spill]] (!%p2602_p5) }
 0x976   : > { %1481 = vrot.lane.b32.xlu0 %v3248_v37, %s2998_s21 }
 0x9e9   : > { %v1327_v9 = vpop.xlane.xlu0 %1326 }
 0x9ea   : > { %2916 = vrcp.f32 %v1327_v9 }
 0x9ed   : > { %v1335_v11 = vpop.permute.xlu0 %1334 }
 0x9ee   : > { %v1340_v12 = vsel %vm1065_vm6, %v1335_v11, 0 }
 0x9ef   : > { %2725 = vmatpush3.bf16.msra.mxu0 %v1340_v12 }
 0x9f0   : > { %2736 = vmatprep.subr.bf16.mxu0 %v2989_v5 }
 0x9f1   : > { %v1482_v19 = vpop.permute.xlu0 %1481 }
 0x9f2   : > { %2727 = vmatmul.mubr.msk.bf16.vlgmr.msra.gmra.mrb[8].mxu0 %vm940_vm4, %v1332_v13 }
 0x9f3   : > { %2738 = vmatprep.mubr.msk.bf16.mxu0 %vm2990_vm3, %v2989_v5  ;;  %2737 = vmatpush3.bf16.msra.mxu0 %v1436_v21 }
 0x9f4   : > { %v2917_v14 = vpop.eup %2916  ;;  %2748 = vmatprep.subr.bf16.mxu0 %v2989_v5 }
 0x9f5   : > { %v1331_v15 = vmul.f32 %v2917_v14, %v2913_v4 }
 0x9f7   : > { %v1333_v17 = vpack.c.bf16 %v1331_v15, %v1331_v15 }
 0x9f9   : > { %2733 = vmatmul.mubr.msk.bf16.vlgmr.msra.gmra.mrb[24].mxu1 %vm940_vm4, %v1333_v17 }
 0x9fa   : > { %2743 = vmatpush3.bf16.xpose.msra.mxu1 %v1489_v18  ;;  %2744 = vmatprep.mubr.msk.bf16.mxu1 %vm2990_vm3, %v2989_v5 }
 0x9fb   : > { %2754 = vmatprep.subr.bf16.mxu1 %v2989_v5 }
 0xa01   : > { %2745 = vmatmul.mubr.msk.bf16.vlgmr.msra.gmra.mrb[28].mxu1 %vm940_vm4, %v1482_v19  ;;  %v1701_v19 = vld [vmem:[%s3119_s15 + $0x8] sm:$0xf] }
 0xa02   : > { %2756 = vmatprep.mubr.msk.bf16.mxu1 %vm2990_vm3, %v2989_v5  ;;  %v1707_v20 = vsel %vm1065_vm6, %v1701_v19, 0 }
 0xac5   : > { %v1376_v22 = vpop.f32.mrb[8].mxu0 }
 0xac6   : > { %v2728_v23 = vpop.f32.mrb[9].mxu0 }
 0xac7   : > { %v1379_v24 = vpop.f32.mrb[10].mxu0 }
 0xac8   : > { %v2729_v25 = vpop.f32.mrb[11].mxu0 }
 0xacc   : > { %v1424_v27 = vpop.f32.mrb[24].mxu1 }
 0xacd   : > { %v1431_v28 = vpack.c.bf16 %v1424_v27, %v1376_v22  ;;  %v2734_v30 = vpop.f32.mrb[25].mxu1 }
 0xace   : > { %v1427_v31 = vpop.f32.mrb[26].mxu1 }
 0xacf   : > { %v2735_v34 = vpop.f32.mrb[27].mxu1  ;;  %2739 = vmatmul.mubr.msk.bf16.vlgmr.msra.gmra.mrb[12].mxu0 %vm940_vm4, %v1431_v28 }
 0xad0   : > { %2749 = vmatpush3.bf16.xpose.msra.mxu0 %v1539_v33  ;;  %2750 = vmatprep.mubr.msk.bf16.mxu0 %vm2990_vm3, %v2989_v5 }
 0xad1   : > { %2760 = vmatprep.subr.bf16.mxu0 %v2989_v5 }
 0xad4   : > { %v1525_v35 = vpop.f32.mrb[28].mxu1 }
 0xad5   : > { %v1526_v36 = vadd.f32 %v1525_v35, %v3262_v44  ;;  %v2746_v38 = vpop.f32.mrb[29].mxu1 }
 0xad6   : > { %v1528_v41 = vpop.f32.mrb[30].mxu1 }
 0xad7   : > { %v2747_v42 = vpop.f32.mrb[31].mxu1  ;;  %2751 = vmatmul.mubr.msk.bf16.vlgmr.msra.gmra.mrb[16].mxu0 %vm940_vm4, %v1532_v39  ;;  %v1581_v43 = vsel %vm940_vm4, %v1526_v36, -inf }
 0xad8   : > { %1582 = vmax.xlane.f32.xlu0 %v1581_v43  ;;  %2762 = vmatprep.mubr.msk.bf16.mxu0 %vm2990_vm3, %v2989_v5 }
 0xb65   : > { %v1583_v45 = vpop.xlane.xlu0 %1582 }
 0xb66   : > { %v1587_v46 = vsub.f32 %v1526_v36, %v1583_v45 }
 0xb68   : > { %v1589_v47 = vmul.f32 1.442695, %v1587_v46 }
 0xb6a   : > { %2918 = vpow2.f32 %v1589_v47 }
 0xb74   : > { %v2919_v48 = vpop.eup %2918 }
 0xb75   : > { %v1593_v49 = vsel %vm940_vm4, %v2919_v48, 0.0 }
 0xb76   : > { %1594 = vadd.xlane.f32.xlu0 %v1593_v49 }
 0xba2   : > { %v1472_v50 = vpop.f32.mrb[12].mxu0 }
 0xba3   : > { %v3348_v52 = vadd.f32 %v1472_v50, %v3305_v51  ;;  %v2740_v56 = vpop.f32.mrb[13].mxu0 }
 0xba4   : > { %v1475_v57 = vpop.f32.mrb[14].mxu0 }
 0xba5   : > { %v3351_v58 = vadd.f32 %v1475_v57, %v3307_v53  ;;  %v2741_v59 = vpop.f32.mrb[15].mxu0 }
 0xbaa   : > { %v1575_v60 = vpop.f32.mrb[16].mxu0 }
 0xbab   : > { %v1576_v61 = vadd.f32 %v1575_v60, %v3262_v44  ;;  %v2752_v62 = vpop.f32.mrb[17].mxu0 }
 0xbac   : > { %v1578_v63 = vpop.f32.mrb[18].mxu0 }
 0xbad   : > { %v2753_v0 = vpop.f32.mrb[19].mxu0  ;;  %v1584_v1 = vsel %vm940_vm4, %v1576_v61, -inf }
 0xbae   : > { %1585 = vmax.xlane.f32.xlu1 %v1584_v1 }
 0xbbf   : > { %1653 = vrot.lane.b32.xlu1 %v3242_v32, %s2999_s24 }
 0xbc3   : > { %1754 = vrot.lane.b32.xlu1 %v3240_v29, %s3000_s16 }
 0xbc7   : > { %1804 = vrot.lane.b32.xlu1 %v3242_v32, %s3000_s16 }
 0xbcb   : > { %1802 = vrot.lane.b32.xlu1 %v3256_v40, %s3001_s28 }
 0xc03   : > { %v1595_v8 = vpop.xlane.xlu0 %1594 }
 0xc3b   : > { %v1586_v51 = vpop.xlane.xlu1 %1585 }
 0xc3c   : > { %v1588_v53 = vsub.f32 %v1576_v61, %v1586_v51 }
 0xc3e   : > { %v1591_v2 = vmul.f32 1.442695, %v1588_v53 }
 0xc3f   : > { %v1654_v3 = vpop.permute.xlu1 %1653 }
 0xc40   : > { %2920 = vpow2.f32 %v1591_v2  ;;  %v1659_v4 = vsel %vm1065_vm6, %v1654_v3, 0 }
 0xc41   : > { %2761 = vmatpush3.bf16.msra.mxu0 %v1659_v4  ;;  %2922 = vrcp.f32 %v1595_v8 }
 0xc42   : > { %2772 = vmatprep.subr.bf16.mxu0 %v2989_v5 }
 0xc43   : > { %v1755_v15 = vpop.permute.xlu1 %1754 }
 0xc44   : > { %v1760_v17 = vsel %vm940_vm4, %v1755_v15, 0 }
 0xc47   : > { %v1805_v25 = vpop.permute.xlu1 %1804 }
 0xc48   : > { %v1810_v31 = vsel %vm940_vm4, %v1805_v25, 0 }
 0xc4a   : > { %v2921_v6 = vpop.eup %2920 }
 0xc4b   : > { %v1596_v7 = vsel %vm940_vm4, %v2921_v6, 0.0  ;;  %v2923_v40 = vpop.eup %2922  ;;  %v1803_v38 = vpop.permute.xlu1 %1802 }
 0xc4c   : > { %1597 = vadd.xlane.f32.xlu0 %v1596_v7  ;;  %v1601_v10 = vmul.f32 %v2923_v40, %v2919_v48 }
 0xc4e   : > { %v1603_v13 = vpack.c.bf16 %v1601_v10, %v1601_v10 }
 0xc62   : > { %1605 = vrot.lane.b32.xlu0 %v3240_v29, %s2999_s24 }
 0xc66   : > { %1752 = vrot.lane.b32.xlu0 %v3248_v37, %s3001_s28 }
 0xcd9   : > { %v1598_v9 = vpop.xlane.xlu0 %1597 }
 0xcda   : > { %2924 = vrcp.f32 %v1598_v9 }
 0xcdd   : > { %v1606_v11 = vpop.permute.xlu0 %1605 }
 0xcde   : > { %v1611_v12 = vsel %vm1065_vm6, %v1606_v11, 0 }
 0xcdf   : > { %2755 = vmatpush3.bf16.msra.mxu1 %v1611_v12 }
 0xce0   : > { %2766 = vmatprep.subr.bf16.mxu1 %v2989_v5 }
 0xce1   : > { %v1753_v18 = vpop.permute.xlu0 %1752 }
 0xce2   : > { %2757 = vmatmul.mubr.msk.bf16.vlgmr.msra.gmra.mrb[32].mxu1 %vm940_vm4, %v1603_v13  ;;  %v1972_v13 = vld [vmem:[%s3119_s15 + $0xc] sm:$0xf] }
 0xce3   : > { %2768 = vmatprep.mubr.msk.bf16.mxu1 %vm2990_vm3, %v2989_v5  ;;  %2767 = vmatpush3.bf16.msra.mxu1 %v1707_v20 }
 0xce4   : > { %v2925_v37 = vpop.eup %2924  ;;  %2778 = vmatprep.subr.bf16.mxu1 %v2989_v5 }
 0xce5   : > { %v1602_v14 = vmul.f32 %v2925_v37, %v2921_v6  ;;  %v1978_v37 = vsel %vm1065_vm6, %v1972_v13, 0 }
 0xce7   : > { %v1604_v16 = vpack.c.bf16 %v1602_v14, %v1602_v14 }
 0xce9   : > { %2763 = vmatmul.mubr.msk.bf16.vlgmr.msra.gmra.mrb[20].mxu0 %vm940_vm4, %v1604_v16 }
 0xcea   : > { %2773 = vmatpush3.bf16.xpose.msra.mxu0 %v1760_v17  ;;  %2774 = vmatprep.mubr.msk.bf16.mxu0 %vm2990_vm3, %v2989_v5 }
 0xceb   : > { %2784 = vmatprep.subr.bf16.mxu0 %v2989_v5 }
 0xcf1   : > { %2775 = vmatmul.mubr.msk.bf16.vlgmr.msra.gmra.mrb[24].mxu0 %vm940_vm4, %v1753_v18 }
 0xcf2   : > { %2786 = vmatprep.mubr.msk.bf16.mxu0 %vm2990_vm3, %v2989_v5 }
 0xdb5   : > { %v1647_v21 = vpop.f32.mrb[32].mxu1 }
 0xdb6   : > { %v2758_v22 = vpop.f32.mrb[33].mxu1 }
 0xdb7   : > { %v1650_v23 = vpop.f32.mrb[34].mxu1 }
 0xdb8   : > { %v2759_v24 = vpop.f32.mrb[35].mxu1 }
 0xdbc   : > { %v1695_v26 = vpop.f32.mrb[20].mxu0 }
 0xdbd   : > { %v1702_v27 = vpack.c.bf16 %v1695_v26, %v1647_v21  ;;  %v2764_v28 = vpop.f32.mrb[21].mxu0  ;;  %v2586_v26 = vld [vmem:[%s597_s23] ss:$0 sm:$0xff] }
 0xdbe   : > { %v1698_v30 = vpop.f32.mrb[22].mxu0 }
 0xdbf   : > { %v2765_v33 = vpop.f32.mrb[23].mxu0  ;;  %2769 = vmatmul.mubr.msk.bf16.vlgmr.msra.gmra.mrb[36].mxu1 %vm940_vm4, %v1702_v27 }
 0xdc0   : > { %2779 = vmatpush3.bf16.xpose.msra.mxu1 %v1810_v31  ;;  %2780 = vmatprep.mubr.msk.bf16.mxu1 %vm2990_vm3, %v2989_v5 }
 0xdc1   : > { %2790 = vmatprep.subr.bf16.mxu1 %v2989_v5 }
 0xdc4   : > { %v1796_v34 = vpop.f32.mrb[24].mxu0 }
 0xdc5   : > { %v1797_v35 = vadd.f32 %v1796_v34, %v3262_v44  ;;  %v2776_v36 = vpop.f32.mrb[25].mxu0 }
 0xdc6   : > { %v1799_v39 = vpop.f32.mrb[26].mxu0 }
 0xdc7   : > { %v2777_v41 = vpop.f32.mrb[27].mxu0  ;;  %2781 = vmatmul.mubr.msk.bf16.vlgmr.msra.gmra.mrb[40].mxu1 %vm940_vm4, %v1803_v38  ;;  %v1852_v42 = vsel %vm940_vm4, %v1797_v35, -inf }
 0xdc8   : > { %1853 = vmax.xlane.f32.xlu0 %v1852_v42  ;;  %2792 = vmatprep.mubr.msk.bf16.mxu1 %vm2990_vm3, %v2989_v5 }
 0xe55   : > { %v1854_v43 = vpop.xlane.xlu0 %1853 }
 0xe56   : > { %v1858_v45 = vsub.f32 %v1797_v35, %v1854_v43 }
 0xe58   : > { %v1860_v46 = vmul.f32 1.442695, %v1858_v45 }
 0xe5a   : > { %2926 = vpow2.f32 %v1860_v46 }
 0xe64   : > { %v2927_v47 = vpop.eup %2926 }
 0xe65   : > { %v1864_v48 = vsel %vm940_vm4, %v2927_v47, 0.0 }
 0xe66   : > { %1865 = vadd.xlane.f32.xlu0 %v1864_v48 }
 0xe92   : > { %v1743_v49 = vpop.f32.mrb[36].mxu1 }
 0xe93   : > { %v1750_v50 = vadd.f32 %v1743_v49, %v3348_v52  ;;  %v2770_v56 = vpop.f32.mrb[37].mxu1  ;;  %v2888_v49 = vld [vmem:[%s3128_s6] sm:$0xff]  }
 0xe94   : > { %v1746_v57 = vpop.f32.mrb[38].mxu1 }
 0xe95   : > { %v1751_v59 = vadd.f32 %v1746_v57, %v3351_v58  ;;  %v2771_v60 = vpop.f32.mrb[39].mxu1 }
 0xe9a   : > { %v1846_v61 = vpop.f32.mrb[40].mxu1 }
 0xe9b   : > { %v1847_v62 = vadd.f32 %v1846_v61, %v3262_v44  ;;  %v2782_v63 = vpop.f32.mrb[41].mxu1 }
 0xe9c   : > { %v1849_v0 = vpop.f32.mrb[42].mxu1 }
 0xe9d   : > { %v2783_v1 = vpop.f32.mrb[43].mxu1  ;;  %v1855_v51 = vsel %vm940_vm4, %v1847_v62, -inf  ;;  %v2587_v0 = vld [vmem:[%s3105_s25 + $0x2] ss:$0 sm:$0xff] }
 0xe9e   : > { %1856 = vmax.xlane.f32.xlu1 %v1855_v51 }
 0xeaf   : > { %1924 = vrot.lane.b32.xlu1 %v3242_v32, %s3002_s26 }
 0xef3   : > { %v1866_v6 = vpop.xlane.xlu0 %1865 }
 0xf2b   : > { %v1857_v53 = vpop.xlane.xlu1 %1856 }
 0xf2c   : > { %v1859_v2 = vsub.f32 %v1847_v62, %v1857_v53 }
 0xf2e   : > { %v1862_v52 = vmul.f32 1.442695, %v1859_v2 }
 0xf2f   : > { %v1925_v3 = vpop.permute.xlu1 %1924 }
 0xf30   : > { %2928 = vpow2.f32 %v1862_v52  ;;  %v1930_v58 = vsel %vm1065_vm6, %v1925_v3, 0  ;;  %v2588_v52 = vld [vmem:[%s3105_s25 + $0x3] ss:$0 sm:$0xff] }
 0xf31   : > { %2791 = vmatpush3.bf16.msra.mxu1 %v1930_v58  ;;  %2930 = vrcp.f32 %v1866_v6  ;;  %v2890_v6 = vld [vmem:[%s3138_s18] sm:$0xff]  }
 0xf32   : > { %2802 = vmatprep.subr.bf16.mxu1 %v2989_v5 }
 0xf3a   : > { %v2929_v44 = vpop.eup %2928 }
 0xf3b   : > { %v1867_v4 = vsel %vm940_vm4, %v2929_v44, 0.0  ;;  %v2931_v7 = vpop.eup %2930 }
 0xf3c   : > { %1868 = vadd.xlane.f32.xlu0 %v1867_v4  ;;  %v1872_v8 = vmul.f32 %v2931_v7, %v2927_v47  ;;  %v2891_v7 = vld [vmem:[%s3138_s18 + $0x8] sm:$0xff]  }
 0xf3e   : > { %v1874_v10 = vpack.c.bf16 %v1872_v8, %v1872_v8  ;;  %v2893_v8 = vld [vmem:[%s3138_s18 + $0x18] sm:$0xff]  }
 0xf52   : > { %1876 = vrot.lane.b32.xlu0 %v3240_v29, %s3002_s26 }
 0xfc9   : > { %v1869_v32 = vpop.xlane.xlu0 %1868 }
 0xfca   : > { %2932 = vrcp.f32 %v1869_v32  ;;  %v2892_v32 = vld [vmem:[%s3138_s18 + $0x10] sm:$0xff]  }
 0xfcd   : > { %v1877_v40 = vpop.permute.xlu0 %1876 }
 0xfce   : > { %v1882_v9 = vsel %vm1065_vm6, %v1877_v40, 0  ;;  %v2894_v40 = vld [vmem:[%s3138_s18 + $0x20] sm:$0xff]  }
 0xfcf   : > { %2785 = vmatpush3.bf16.msra.mxu0 %v1882_v9  ;;  %v2895_v9 = vld [vmem:[%s3138_s18 + $0x28] sm:$0xff]  }
 0xfd0   : > { %2796 = vmatprep.subr.bf16.mxu0 %v2989_v5 }
 0xfd2   : > { %2787 = vmatmul.mubr.msk.bf16.vlgmr.msra.gmra.mrb[28].mxu0 %vm940_vm4, %v1874_v10  ;;  %v2896_v10 = vld [vmem:[%s3138_s18 + $0x30] sm:$0xff]  }
 0xfd3   : > { %2798 = vmatprep.mubr.msk.bf16.mxu0 %vm2990_vm3, %v2989_v5  ;;  %2797 = vmatpush3.bf16.msra.mxu0 %v1978_v37 }
 0xfd4   : > { %v2933_v29 = vpop.eup %2932  ;;  %2810 = vmatprep.subr.bf16.mxu0 %v2989_v5 }
 0xfd5   : > { %v1873_v11 = vmul.f32 %v2933_v29, %v2929_v44  ;;  %v2897_v29 = vld [vmem:[%s3138_s18 + $0x38] sm:$0xff]  }
 0xfd7   : > { %v1875_v12 = vpack.c.bf16 %v1873_v11, %v1873_v11  ;;  %v2592_v11 = vld [vmem:[%s605_s7] ss:$0 sm:$0xff] }
 0xfd9   : > { %2793 = vmatmul.mubr.msk.bf16.vlgmr.msra.gmra.mrb[44].mxu1 %vm940_vm4, %v1875_v12 }
 0xfda   : > { %2806 = vmatprep.mubr.msk.bf16.mxu1 %vm2990_vm3, %v2989_v5  ;;  %2803 = vmatpush3.bf16.msra.mxu1 %v2888_v49 }
 0xfdb   : > { %2804 = vmatprep.subr.bf16.mxu1 %v2989_v5 }
0x10a5   : > { %v1918_v14 = vpop.f32.mrb[28].mxu0 }
0x10a6   : > { %v2788_v15 = vpop.f32.mrb[29].mxu0 }
0x10a7   : > { %v1921_v16 = vpop.f32.mrb[30].mxu0 }
0x10a8   : > { %v2789_v17 = vpop.f32.mrb[31].mxu0 }
0x10ac   : > { %v1966_v18 = vpop.f32.mrb[44].mxu1 }
0x10ad   : > { %v1973_v19 = vpack.c.bf16 %v1966_v18, %v1918_v14  ;;  %v2794_v20 = vpop.f32.mrb[45].mxu1 }
0x10ae   : > { %v1969_v21 = vpop.f32.mrb[46].mxu1 }
0x10af   : > { %v2795_v22 = vpop.f32.mrb[47].mxu1  ;;  %2799 = vmatmul.mubr.msk.bf16.vlgmr.msra.gmra.mrb[32].mxu0 %vm940_vm4, %v1973_v19 }
0x10b0   : > { %2826 = vmatprep.mubr.msk.bf16.mxu0 %vm2990_vm3, %v2989_v5  ;;  %2811 = vmatpush3.bf16.msra.mxu0 %v2890_v6 }
0x10b1   : > { %2812 = vmatprep.subr.bf16.mxu0 %v2989_v5 }
0x10b4   : > { %2813 = vmatpush3.bf16.msra.mxu0 %v2891_v7 }
0x10b5   : > { %2814 = vmatprep.subr.bf16.mxu0 %v2989_v5 }
0x10b8   : > { %2815 = vmatpush3.bf16.msra.mxu0 %v2892_v32 }
0x10b9   : > { %2816 = vmatprep.subr.bf16.mxu0 %v2989_v5 }
0x10bc   : > { %2817 = vmatpush3.bf16.msra.mxu0 %v2893_v8 }
0x10bd   : > { %2818 = vmatprep.subr.bf16.mxu0 %v2989_v5 }
0x10c0   : > { %2819 = vmatpush3.bf16.msra.mxu0 %v2894_v40 }
0x10c1   : > { %2820 = vmatprep.subr.bf16.mxu0 %v2989_v5 }
0x10c4   : > { %2821 = vmatpush3.bf16.msra.mxu0 %v2895_v9 }
0x10c5   : > { %2822 = vmatprep.subr.bf16.mxu0 %v2989_v5 }
0x10c8   : > { %2823 = vmatpush3.bf16.msra.mxu0 %v2896_v10 }
0x10c9   : > { %2824 = vmatprep.subr.bf16.mxu0 %v2989_v5 }
0x10cc   : > { %2825 = vmatpush3.bf16.msra.mxu0 %v2897_v29 }
0x1182   : > { %v2014_v23 = vpop.f32.mrb[32].mxu0 }
0x1183   : > { %v2021_v24 = vadd.f32 %v2014_v23, %v1750_v50  ;;  %v2800_v25 = vpop.f32.mrb[33].mxu0  ;;  %v2889_v50 = vld [vmem:[%s3128_s6 + $0x8] sm:$0xff]  }
0x1184   : > { %v2017_v27 = vpop.f32.mrb[34].mxu0  ;;  %2805 = vmatpush3.bf16.msra.mxu1 %v2889_v50 }
0x1185   : > { %v2023_v28 = vadd.f32 %v2021_v24, %v3208_v54  ;;  %v2022_v30 = vadd.f32 %v2017_v27, %v1751_v59  ;;  %v2801_v31 = vpop.f32.mrb[35].mxu0 }
0x1186   : > { %v2601_v31 = vld [vmem:[%s613_s4] ss:$0 sm:$0xff]  ;;  %s3542_s4 = sld [smem:[#allocation8_spill]] (!%p2602_p5) }
0x1187   : > { %v3420_v33 = vadd.f32 %v2586_v26, %v2023_v28  ;;  %v2024_v34 = vadd.f32 %v2022_v30, %v3210_v55 }
0x1189   : > { %v3423_v35 = vadd.f32 %v2586_v26, %v2024_v34  ;;  %v2036_v36 = vsel %vm817_vm2, %v3420_v33, 0.0 }
0x118a   : > { %2037 = vadd.xlane.f32.xlu1 %v2036_v36 }
0x118b   : > { %v2039_v38 = vsel %vm817_vm2, %v3423_v35, 0.0 }
0x118c   : > { %2040 = vadd.xlane.f32.xlu0 %v2039_v38 }
0x1217   : > { %v2038_v39 = vpop.xlane.xlu1 %2037 }
0x1218   : > { %v2042_v54 = vmul.f32 0.03125, %v2038_v39 }
0x1219   : > { %v2041_v41 = vpop.xlane.xlu0 %2040 }
0x121a   : > { %v2044_v42 = vsub.f32 %v3420_v33, %v2042_v54  ;;  %v2043_v43 = vmul.f32 0.03125, %v2041_v41 }
0x121c   : > { %v2045_v55 = vsub.f32 %v3423_v35, %v2043_v43  ;;  %v2046_v45 = vmul.f32 %v2044_v42, %v2044_v42 }
0x121e   : > { %v2048_v46 = vsel %vm817_vm2, %v2046_v45, 0.0  ;;  %v2047_v47 = vmul.f32 %v2045_v55, %v2045_v55 }
0x121f   : > { %2049 = vadd.xlane.f32.xlu0 %v2048_v46 }
0x1220   : > { %v2051_v48 = vsel %vm817_vm2, %v2047_v47, 0.0 }
0x1221   : > { %2052 = vadd.xlane.f32.xlu1 %v2051_v48 }
0x12ac   : > { %v2050_v56 = vpop.xlane.xlu0 %2049 }
0x12ad   : > { %v2054_v57 = vmul.f32 0.03125, %v2050_v56 }
0x12ae   : > { %v2053_v59 = vpop.xlane.xlu1 %2052 }
0x12af   : > { %v2056_v60 = vadd.f32 1e-05, %v2054_v57  ;;  %v2055_v61 = vmul.f32 0.03125, %v2053_v59 }
0x12b1   : > { %2934 = vrsqrt.f32 %v2056_v60  ;;  %v2057_v62 = vadd.f32 1e-05, %v2055_v61  ;;  %v2946_v60 = vld [vmem:[%s3542_s4] sm:$0xff] (!%p2602_p5)   ;;  %v3003_v61 = vmov (!%p2602_p5), 0.0  }
0x12b2   : > { %2830 = vmatprep.subr.bf16.mxu0 (!%p2602_p5), %v3003_v61 }
0x12b3   : > { %2936 = vrsqrt.f32 %v2057_v62  ;;  %v2947_v62 = vld [vmem:[%s3542_s4 + $0x8] sm:$0xff] (!%p2602_p5)  }
0x12bb   : > { %v2935_v63 = vpop.eup %2934 }
0x12bc   : > { %v2060_v1 = vmul.f32 %v2935_v63, %v2044_v42 }
0x12bd   : > { %v2937_v51 = vpop.eup %2936 }
0x12be   : > { %v2066_v53 = vmul.f32 %v2587_v0, %v2060_v1  ;;  %v2061_v2 = vmul.f32 %v2937_v51, %v2045_v55 }
0x12c0   : > { %v2067_v3 = vmul.f32 %v2587_v0, %v2061_v2  ;;  %v2072_v58 = vadd.f32 %v2588_v52, %v2066_v53  ;;  %v2603_v53 = vld [vmem:[%s3543_s5] ss:$0 sm:$0xff] (!%p2602_p5) }
0x12c2   : > { %v2073_v44 = vadd.f32 %v2588_v52, %v2067_v3  ;;  %v2604_v3 = vld [vmem:[%s3543_s5 + $0x1] ss:$0 sm:$0xff] (!%p2602_p5) }
0x12c4   : > { %v2078_v4 = vpack.c.bf16 %v2073_v44, %v2072_v58 }
0x12c6   : > { %2807 = vmatmul.mubr.msk.bf16.vlgmr.msra.gmra.mrb[48].mxu1 %vm817_vm2, %v2078_v4 }
0x1399   : > { %v2128_v12 = vpop.f32.mrb[48].mxu1 }
0x139a   : > { %v2142_v13 = vadd.f32 %v2592_v11, %v2128_v12  ;;  %v2808_v37 = vpop.f32.mrb[49].mxu1 }
0x139b   : > { %v2131_v14 = vpop.f32.mrb[50].mxu1 }
0x139c   : > { %v2144_v15 = vmul.f32 -1.702, %v2142_v13  ;;  %v2143_v16 = vadd.f32 %v2592_v11, %v2131_v14  ;;  %v2809_v17 = vpop.f32.mrb[51].mxu1 }
0x139e   : > { %v2146_v18 = vmul.f32 1.442695, %v2144_v15  ;;  %v2145_v19 = vmul.f32 -1.702, %v2143_v16 }
0x13a0   : > { %2938 = vpow2.f32 %v2146_v18  ;;  %v2148_v20 = vmul.f32 1.442695, %v2145_v19 }
0x13a2   : > { %2940 = vpow2.f32 %v2148_v20 }
0x13aa   : > { %v2939_v5 = vpop.eup %2938 }
0x13ab   : > { %v2150_v21 = vadd.f32 1.0, %v2939_v5 }
0x13ac   : > { %v2941_v22 = vpop.eup %2940 }
0x13ad   : > { %2942 = vrcp.f32 %v2150_v21  ;;  %v2151_v23 = vadd.f32 1.0, %v2941_v22 }
0x13af   : > { %2944 = vrcp.f32 %v2151_v23 }
0x13b7   : > { %v2943_v24 = vpop.eup %2942 }
0x13b8   : > { %v2156_v26 = vmul.f32 %v2943_v24, %v2142_v13 }
0x13b9   : > { %v2945_v25 = vpop.eup %2944 }
0x13ba   : > { %v2157_v27 = vmul.f32 %v2945_v25, %v2143_v16 }
0x13bc   : > { %v2174_v28 = vpack.c.bf16 %v2157_v27, %v2156_v26 }
0x13be   : > { %2827 = vmatmul.mubr.bf16.vlgmr.msra.gmra.mrb[36].mxu0 %v2174_v28 }
0x13bf   : > { %2834 = vmatprep.mubr.msk.bf16.mxu0 (!%p2602_p5), %vm3004_vm9, %v3003_v61  ;;  %2831 = vmatpush3.bf16.msra.mxu0 (!%p2602_p5), %v2946_v60 }
0x13c0   : > { %2832 = vmatprep.subr.bf16.mxu0 (!%p2602_p5), %v3003_v61 }
0x13c3   : > { %2833 = vmatpush3.bf16.msra.mxu0 (!%p2602_p5), %v2947_v62 }
0x1491   : > { %v2257_v30 = vpop.f32.mrb[36].mxu0 }
0x1492   : > { %v2264_v34 = vadd.f32 %v2257_v30, %v3420_v33  ;;  %v2828_v36 = vpop.f32.mrb[37].mxu0  ;;  %2280 = sbr.rel (%p2602_p5) target bundleno = 5819 (0x16bb), region = 88 }
0x1493   : > { %v2260_v38 = vpop.f32.mrb[38].mxu0 }
0x1494   : > { %v2273_v39 = vadd.f32 %v2601_v31, %v2264_v34  ;;  %v2265_v54 = vadd.f32 %v2260_v38, %v3423_v35  ;;  %v2829_v41 = vpop.f32.mrb[39].mxu0 }
0x1496   : > { %2275 = vst.msk [vmem:[#allocation2] sm:$0xff] %vm817_vm2, %v2273_v39  ;;  %v2274_v42 = vadd.f32 %v2601_v31, %v2265_v54 }
0x1498   : > { %2276 = vst.msk [vmem:[#allocation2 + $0x8] sm:$0xff] %vm817_vm2, %v2274_v42  ;;  %v2285_v43 = vrot.slane (!%p2602_p5), %v2274_v42, 7 }
0x149a   : > { %v2287_v55 = vsel %vm2286_vm7, %v2285_v43, %v2273_v39 }
0x149b   : > { %v2290_v33 = vsel %vm2289_vm8, %v2287_v55, 0.0 }
0x149c   : > { %2291 = vadd.xlane.f32.xlu0 %v2290_v33 }
0x1529   : > { %v2292_v45 = vpop.xlane.xlu0 %2291 }
0x152a   : > { %v2293_v46 = vmul.f32 0.03125, %v2292_v45 }
0x152c   : > { %v2295_v47 = vrot.slane %v2293_v46, 1  ;;  %v2298_v35 = vsub.f32 %v2273_v39, %v2293_v46 }
0x152e   : > { %v2299_v48 = vsub.f32 %v2274_v42, %v2295_v47  ;;  %v2300_v50 = vmul.f32 %v2298_v35, %v2298_v35 }
0x1530   : > { %v2301_v49 = vmul.f32 %v2299_v48, %v2299_v48 }
0x1532   : > { %v2304_v56 = vrot.slane %v2301_v49, 7 }
0x1534   : > { %v2305_v57 = vsel %vm2286_vm7, %v2304_v56, %v2300_v50 }
0x1535   : > { %v2307_v59 = vsel %vm2289_vm8, %v2305_v57, 0.0 }
0x1536   : > { %2308 = vadd.xlane.f32.xlu0 %v2307_v59 }
0x15c3   : > { %v2309_v63 = vpop.xlane.xlu0 %2308 }
0x15c4   : > { %v2310_v0 = vmul.f32 0.03125, %v2309_v63 }
0x15c6   : > { %v2311_v1 = vadd.f32 1e-05, %v2310_v0 }
0x15c8   : > { %2948 = vrsqrt.f32 %v2311_v1 }
0x15d2   : > { %v2949_v51 = vpop.eup %2948 }
0x15d3   : > { %v2314_v2 = vrot.slane %v2949_v51, 1  ;;  %v2317_v52 = vmul.f32 %v2949_v51, %v2298_v35 }
0x15d5   : > { %v2318_v58 = vmul.f32 %v2314_v2, %v2299_v48  ;;  %v2323_v44 = vmul.f32 %v2603_v53, %v2317_v52 }
0x15d7   : > { %v2324_v4 = vmul.f32 %v2603_v53, %v2318_v58  ;;  %v2329_v6 = vadd.f32 %v2604_v3, %v2323_v44 }
0x15d9   : > { %v2330_v7 = vadd.f32 %v2604_v3, %v2324_v4  ;;  %v2335_v32 = vpack.c.bf16 %v2329_v6, %v2329_v6 }
0x15db   : > { %v2336_v8 = vpack.c.bf16 %v2330_v7, %v2330_v7  ;;  %v2339_v9 = vunpack.c.l.b16 %v2335_v32 }
0x15dd   : > { %v2340_v40 = vunpack.c.l.b16 %v2336_v8 }
0x15df   : > { %v2341_v10 = vrot.slane %v2340_v40, 7 }
0x15e1   : > { %v2342_v29 = vsel %vm2286_vm7, %v2341_v10, %v2339_v9 }
0x15e2   : > { %v2343_v11 = vpack.c.b16 %v2342_v29, %v2342_v29 }
0x15e4   : > { %2835 = vmatmul.mubr.msk.bf16.vlgmr.msra.gmra.mrb[0].mxu0 %vm817_vm2, %v2343_v11 }
0x16b7   : > { %v2393_v12 = vpop.f32.mrb[0].mxu0 }
0x16b8   : > { %2400 = vst.msk [vmem:[#allocation3] sm:$0x3] %vm2399_vm10, %v2393_v12  ;;  %v2836_v13 = vpop.f32.mrb[1].mxu0 }
0x16b9   : > { %v2396_v37 = vpop.f32.mrb[2].mxu0 }
0x16ba   : > { %v2837_v14 = vpop.f32.mrb[3].mxu0 }
0x16bb PF: > { %p2842_p6 = scmp.eq.s32.totalorder %s3092_s19, 1  ;;  %s3005_s24 = smov [#allocation3]  }
0x16bc   : > { %s2408_s16 = sshll.u32 %s3005_s24, 4  ;;  %s2409_s16 = int_to_ptr.vmem [resolvable:$true] %s2408_s16 }
0x16bd   : > { %s2950_s28 = scalar_lea.vmem %s2409_s16, 32  ;;  %p2957_p10 = scmp.lt.s32.totalorder %s2409_s16, %s2409_s16 }
0x16be   : > { %p2951_p7 = scmp.ne.s32.totalorder %s2409_s16, %s2950_s28  ;;  %p2958_p11 = scmp.lt.s32.totalorder %s2950_s28, %s2950_s28 }
0x16c0   : > { %p2952_p8 = pnand %p2951_p7, %p2842_p6  ;;  %p2959_p12 = por %p2958_p11, %p2957_p10 }
0x16c2   : > { %p2953_p9 = pneg %p2952_p8 }
0x16c4   : > { %p2960_p13 = pnand %p2959_p12, %p2953_p9 }
0x16c6   : > { %2963 = shalt.err (!%p2960_p13)
}
0x16c7   : > { %s3544_s9 = sld [smem:[#allocation12_spill]] }
0x16cd   : > { %s2964_s6 = scalar_lea.hbm %s3544_s9, 32 }
0x16ce   : > { %p2965_p0 = scmp.ne.s32.totalorder %s3544_s9, %s2964_s6  ;;  %p2970_p3 = scmp.lt.u32.totalorder %s2964_s6, %s3544_s9 }
0x16d0   : > { %p2966_p1 = pnand %p2965_p0, %p2842_p6 }
0x16d2   : > { %p2967_p2 = pneg %p2966_p1 }
0x16d4   : > { %p2972_p4 = pnand %p2970_p3, %p2967_p2 }
0x16d6   : > { %2975 = shalt.err (!%p2972_p4)
}
0x16d7   : > { %2839 = dma.vmem_to_hbm [thread:$0]  (%p2842_p6), %s2409_s16, 32, %s3544_s9, [#allocation4]  }
0x16d8   : > { %2981 = dma.done.wait (%p2842_p6), [#allocation4], 32  }
0x16d9   : > { %2983 = vsyncadd (%p2842_p6), [#allocation4], 4294967264 }
0x16da PF: > { %s3545_s29 = sld [smem:[#allocation6_spill]] }
0x16e0   : > { %s26_s18 = sadd.s32 1, %s3545_s29  }
0x16e1   : > { %p23_p5 = scmp.ge.s32.totalorder %s26_s18, 4  }
0x16e3   :  { %25 = sbr.rel (!%p23_p5) target bundleno = 8 (0x8), region = 139 }
0x16ea   :  { %2421 = vsyncpa [#allocation4], 1 }
0x16eb   :  { %2423 = vsyncpa [#allocation4 + $0x1], 1 }

</bundles_post_ra>
